<compile_context>
chip_gen: v6e
topology: v6e:2x2x1
jax: 0.10.0
libtpu: 0.0.40
codegen_flags: <defaults>
</compile_context>

<pallas_src>
import jax
import jax.numpy as jnp
from jax.experimental import pallas as pl
from jax.experimental.pallas import tpu as pltpu

NUM_CLASSES = 54
OUT_PAD = 128          # lane-dense padded output width
IN_PAD = 128           # padded contraction dim of the fused first Linear
FEAT_DIM = 2048
H1 = 1024
H2 = 512
BN_EPS = 1e-5


# ----------------------------------------------------------------------------
# Fused classifier kernel: 3 dots + 2 ReLUs, one batch tile per grid step.
# All weights (bf16) stay VMEM-resident (single-buffered) across the grid.
# ----------------------------------------------------------------------------
def _classifier_kernel(feat_ref,
                       w1_ref, b1_ref,
                       w2_ref, b2_ref,
                       w3_ref, b3_ref,
                       o_ref):
    f = feat_ref[...].astype(jnp.bfloat16)                              # (TB, IN_PAD)

    # Linear(2048,1024) with backbone projection folded in (eval: Dropout = id).
    h = jnp.dot(f, w1_ref[...],
                preferred_element_type=jnp.float32) + b1_ref[...]       # (TB, 1024)
    h = jnp.maximum(h, 0.0)                                             # ReLU

    # Linear(1024,512) with BatchNorm1d(1024) folded in.
    h = jnp.dot(h.astype(jnp.bfloat16), w2_ref[...],
                preferred_element_type=jnp.float32) + b2_ref[...]       # (TB, 512)
    h = jnp.maximum(h, 0.0)                                             # ReLU

    # Linear(512,54) with BatchNorm1d(512) folded in, padded to 128 lanes.
    o_ref[...] = jnp.dot(h.astype(jnp.bfloat16), w3_ref[...],
                         preferred_element_type=jnp.float32) + b3_ref[...]


def network_forward(x_nchw, params, *, block_b=128):
    B, C, H, W = x_nchw.shape

    # Backbone stand-in (GAP) hoisted out of the kernel: tiny (B, C) tensor.
    # TODO(synk): real ResNet50 conv trunk not implementable in-script.
    feat = jnp.mean(x_nchw, axis=(-2, -1))                              # (B, C) f32
    k_pad = params["w1"].shape[0]                                       # IN_PAD
    feat = jnp.zeros((B, k_pad), jnp.float32).at[:, :C].set(feat)

    # Batch tile: multiple of 8 sublanes, capped at block_b.
    tb = min(block_b, max(8, ((B + 7) // 8) * 8))
    grid = (pl.cdiv(B, tb),)

    def _wspec(shape):
        # Constant block index -> keep single-buffered and VMEM-resident.
        return pl.BlockSpec(shape, lambda i: (0, 0),
                            pipeline_mode=pl.Buffered(1))

    in_specs = [
        pl.BlockSpec((tb, k_pad), lambda i: (i, 0)),   # feat (batch-tiled)
        _wspec((k_pad, H1)),                           # w1 (proj folded, bf16)
        _wspec((1, H1)),                               # b1 (f32)
        _wspec((H1, H2)),                              # w2 (BN1 folded, bf16)
        _wspec((1, H2)),                               # b2
        _wspec((H2, OUT_PAD)),                         # w3 (BN2 folded, padded, bf16)
        _wspec((1, OUT_PAD)),                          # b3
    ]
    out_specs = pl.BlockSpec((tb, OUT_PAD), lambda i: (i, 0))

    flops = 2 * B * (k_pad * H1 + H1 * H2 + H2 * OUT_PAD)
    bytes_accessed = (
        B * k_pad * 4 + B * OUT_PAD * 4                                 # activations
        + 2 * (k_pad * H1 + H1 * H2 + H2 * OUT_PAD)                     # bf16 weights
        + 4 * (H1 + H2 + OUT_PAD)                                       # f32 biases
    )

    out_padded = pl.pallas_call(
        _classifier_kernel,
        out_shape=jax.ShapeDtypeStruct((B, OUT_PAD), jnp.float32),
        grid=grid,
        in_specs=in_specs,
        out_specs=out_specs,
        compiler_params=pltpu.CompilerParams(
            dimension_semantics=("parallel",),          # shard batch across TCs (v7x)
            vmem_limit_bytes=32 << 20,                  # fits v5e/v6e/v7x
        ),
        cost_estimate=pl.CostEstimate(
            flops=flops, transcendentals=0, bytes_accessed=bytes_accessed),
    )(feat,
      params["w1"], params["b1"],
      params["w2"], params["b2"],
      params["w3"], params["b3"])

    return out_padded[:, :NUM_CLASSES]


# ----------------------------------------------------------------------------
# Deterministic parameter init (PyTorch nn.Linear default U(-k, k), k=1/sqrt(fan_in);
# BatchNorm1d: gamma=1, beta=0, running_mean=0, running_var=1). Linear weights are
# stored transposed as (in, out).  Eval-mode BN is folded into the following
# Linear; the backbone projection is folded into the first Linear.
# ----------------------------------------------------------------------------
def _linear_params(key, fan_in, fan_out):
    kw, kb = jax.random.split(key)
    bound = 1.0 / (fan_in ** 0.5)
    w = jax.random.uniform(kw, (fan_in, fan_out), jnp.float32, -bound, bound)
    b = jax.random.uniform(kb, (fan_out,), jnp.float32, -bound, bound)
    return w, b


def _bn_scale_shift(dim):
    gamma = jnp.ones((dim,), jnp.float32)
    beta = jnp.zeros((dim,), jnp.float32)
    running_mean = jnp.zeros((dim,), jnp.float32)
    running_var = jnp.ones((dim,), jnp.float32)
    scale = gamma / jnp.sqrt(running_var + BN_EPS)
    shift = beta - running_mean * scale
    return scale, shift


def init_params(key, in_channels):
    k0, k1, k2, k3 = jax.random.split(key, 4)
    w_proj, b_proj = _linear_params(k0, in_channels, FEAT_DIM)
    w1, b1 = _linear_params(k1, FEAT_DIM, H1)
    w2, b2 = _linear_params(k2, H1, H2)
    w3, b3 = _linear_params(k3, H2, NUM_CLASSES)

    # Fold eval-mode BN into the next Linear:
    #   (h*s + t) @ W + b == h @ (diag(s) W) + (t @ W + b)
    s1, t1 = _bn_scale_shift(H1)
    s2, t2 = _bn_scale_shift(H2)
    w2f = s1[:, None] * w2
    b2f = b2 + t1 @ w2
    w3f = s2[:, None] * w3
    b3f = b3 + t2 @ w3

    # Fold backbone projection into the first classifier Linear (eval mode:
    # Dropout = identity, no nonlinearity in between):
    #   (feat @ Wp + bp) @ W1 + b1 == feat @ (Wp @ W1) + (bp @ W1 + b1)
    # NOTE: remove this fold when a real ResNet trunk replaces the GAP stand-in.
    w1f = w_proj @ w1                                   # (C, H1)
    b1f = b_proj @ w1 + b1

    # Pad contraction dim C -> IN_PAD (zeros) and final projection to 128 lanes.
    w1p = jnp.zeros((IN_PAD, H1), jnp.float32).at[:in_channels, :].set(w1f)
    w3p = jnp.zeros((H2, OUT_PAD), jnp.float32).at[:, :NUM_CLASSES].set(w3f)
    b3p = jnp.zeros((OUT_PAD,), jnp.float32).at[:NUM_CLASSES].set(b3f)

    bf16 = lambda w: w.astype(jnp.bfloat16)
    row = lambda b: b.reshape(1, -1).astype(jnp.float32)

    return {
        "w1": bf16(w1p), "b1": row(b1f),
        "w2": bf16(w2f), "b2": row(b2f),
        "w3": bf16(w3p), "b3": row(b3p),
    }


if __name__ == "__main__":
    key = jax.random.PRNGKey(0)
    kx, kp = jax.random.split(key)

    # Small NCHW image batch consistent with the module's conv input.
    B, C, H, W = 2, 3, 16, 16
    x = jax.random.normal(kx, (B, C, H, W), jnp.float32)

    params = init_params(kp, in_channels=C)

    fwd = jax.jit(network_forward)
    out = fwd(x, params)
    out = jax.block_until_ready(out)
    assert out.shape == (B, NUM_CLASSES) and out.dtype == jnp.float32
    assert bool(jnp.all(jnp.isfinite(out)))
    print("KERNEL_OK")
</pallas_src>

<mosaic_0001>
module attributes {stable_mosaic.version = 11 : i64} {
  func.func @_classifier_kernel(%arg0: i32, %arg1: memref<8x128xf32, #tpu.memory_space<vmem>>, %arg2: memref<128x1024xbf16, #tpu.memory_space<vmem>>, %arg3: memref<1x1024xf32, #tpu.memory_space<vmem>>, %arg4: memref<1024x512xbf16, #tpu.memory_space<vmem>>, %arg5: memref<1x512xf32, #tpu.memory_space<vmem>>, %arg6: memref<512x128xbf16, #tpu.memory_space<vmem>>, %arg7: memref<1x128xf32, #tpu.memory_space<vmem>>, %arg8: memref<8x128xf32, #tpu.memory_space<vmem>>) attributes {dimension_semantics = [#tpu.dimension_semantics<parallel>], iteration_bounds = array<i64: 1>, scalar_prefetch = 0 : i64, scratch_operands = 0 : i64, tpu.core_type = #tpu.core_type<tc>, window_params = [{transform_indices = @transform_0, window_bounds = array<i64: 8, 128>}, {pipeline_mode = #tpu.pipeline_mode<synchronous>, transform_indices = @transform_1, window_bounds = array<i64: 128, 1024>}, {pipeline_mode = #tpu.pipeline_mode<synchronous>, transform_indices = @transform_2, window_bounds = array<i64: 1, 1024>}, {pipeline_mode = #tpu.pipeline_mode<synchronous>, transform_indices = @transform_3, window_bounds = array<i64: 1024, 512>}, {pipeline_mode = #tpu.pipeline_mode<synchronous>, transform_indices = @transform_4, window_bounds = array<i64: 1, 512>}, {pipeline_mode = #tpu.pipeline_mode<synchronous>, transform_indices = @transform_5, window_bounds = array<i64: 512, 128>}, {pipeline_mode = #tpu.pipeline_mode<synchronous>, transform_indices = @transform_6, window_bounds = array<i64: 1, 128>}, {transform_indices = @transform_7, window_bounds = array<i64: 8, 128>}]} {
    %c0 = arith.constant 0 : index
    %c0_0 = arith.constant 0 : index
    %0 = vector.load %arg1[%c0, %c0_0] : memref<8x128xf32, #tpu.memory_space<vmem>>, vector<8x128xf32>
    %1 = arith.truncf %0 : vector<8x128xf32> to vector<8x128xbf16>
    %c0_1 = arith.constant 0 : index
    %c0_2 = arith.constant 0 : index
    %2 = vector.load %arg2[%c0_1, %c0_2] : memref<128x1024xbf16, #tpu.memory_space<vmem>>, vector<128x1024xbf16>
    %cst = arith.constant dense<0.000000e+00> : vector<8x1024xf32>
    %3 = tpu.matmul %1, %2, %cst {dimension_numbers = #tpu.dot_dimension_numbers<[1], [0], [0], [1], [0, 0, 1, 1], [], []>} : vector<8x128xbf16>, vector<128x1024xbf16>, vector<8x1024xf32> -> vector<8x1024xf32>
    %c0_3 = arith.constant 0 : index
    %c0_4 = arith.constant 0 : index
    %4 = vector.load %arg3[%c0_3, %c0_4] : memref<1x1024xf32, #tpu.memory_space<vmem>>, vector<1x1024xf32>
    %5 = vector.broadcast %4 : vector<1x1024xf32> to vector<8x1024xf32>
    %6 = arith.addf %3, %5 : vector<8x1024xf32>
    %cst_5 = arith.constant 0.000000e+00 : f32
    %7 = vector.broadcast %cst_5 : f32 to vector<8x1024xf32>
    %8 = arith.maximumf %6, %7 : vector<8x1024xf32>
    %9 = arith.truncf %8 : vector<8x1024xf32> to vector<8x1024xbf16>
    %c0_6 = arith.constant 0 : index
    %c0_7 = arith.constant 0 : index
    %10 = vector.load %arg4[%c0_6, %c0_7] : memref<1024x512xbf16, #tpu.memory_space<vmem>>, vector<1024x512xbf16>
    %cst_8 = arith.constant dense<0.000000e+00> : vector<8x512xf32>
    %11 = tpu.matmul %9, %10, %cst_8 {dimension_numbers = #tpu.dot_dimension_numbers<[1], [0], [0], [1], [0, 0, 1, 1], [], []>} : vector<8x1024xbf16>, vector<1024x512xbf16>, vector<8x512xf32> -> vector<8x512xf32>
    %c0_9 = arith.constant 0 : index
    %c0_10 = arith.constant 0 : index
    %12 = vector.load %arg5[%c0_9, %c0_10] : memref<1x512xf32, #tpu.memory_space<vmem>>, vector<1x512xf32>
    %13 = vector.broadcast %12 : vector<1x512xf32> to vector<8x512xf32>
    %14 = arith.addf %11, %13 : vector<8x512xf32>
    %cst_11 = arith.constant 0.000000e+00 : f32
    %15 = vector.broadcast %cst_11 : f32 to vector<8x512xf32>
    %16 = arith.maximumf %14, %15 : vector<8x512xf32>
    %17 = arith.truncf %16 : vector<8x512xf32> to vector<8x512xbf16>
    %c0_12 = arith.constant 0 : index
    %c0_13 = arith.constant 0 : index
    %18 = vector.load %arg6[%c0_12, %c0_13] : memref<512x128xbf16, #tpu.memory_space<vmem>>, vector<512x128xbf16>
    %cst_14 = arith.constant dense<0.000000e+00> : vector<8x128xf32>
    %19 = tpu.matmul %17, %18, %cst_14 {dimension_numbers = #tpu.dot_dimension_numbers<[1], [0], [0], [1], [0, 0, 1, 1], [], []>} : vector<8x512xbf16>, vector<512x128xbf16>, vector<8x128xf32> -> vector<8x128xf32>
    %c0_15 = arith.constant 0 : index
    %c0_16 = arith.constant 0 : index
    %20 = vector.load %arg7[%c0_15, %c0_16] : memref<1x128xf32, #tpu.memory_space<vmem>>, vector<1x128xf32>
    %21 = vector.broadcast %20 : vector<1x128xf32> to vector<8x128xf32>
    %22 = arith.addf %19, %21 : vector<8x128xf32>
    %c0_17 = arith.constant 0 : index
    %c0_18 = arith.constant 0 : index
    %23 = vector.load %arg8[%c0_17, %c0_18] : memref<8x128xf32, #tpu.memory_space<vmem>>, vector<8x128xf32>
    tpu.vector_store %arg8[%c0_17, %c0_18], %22 {strides = array<i32>} : memref<8x128xf32, #tpu.memory_space<vmem>>, vector<8x128xf32>,
    return
  }
  func.func @transform_0(%arg0: i32) -> (i32, i32) {
    %c0_i32 = arith.constant 0 : i32
    %c0_i32_0 = arith.constant 0 : i32
    return %arg0, %c0_i32 : i32, i32
  }
  func.func @transform_1(%arg0: i32) -> (i32, i32) {
    %c0_i32 = arith.constant 0 : i32
    %c0_i32_0 = arith.constant 0 : i32
    %c0_i32_1 = arith.constant 0 : i32
    return %c0_i32, %c0_i32_0 : i32, i32
  }
  func.func @transform_2(%arg0: i32) -> (i32, i32) {
    %c0_i32 = arith.constant 0 : i32
    %c0_i32_0 = arith.constant 0 : i32
    %c0_i32_1 = arith.constant 0 : i32
    return %c0_i32, %c0_i32_0 : i32, i32
  }
  func.func @transform_3(%arg0: i32) -> (i32, i32) {
    %c0_i32 = arith.constant 0 : i32
    %c0_i32_0 = arith.constant 0 : i32
    %c0_i32_1 = arith.constant 0 : i32
    return %c0_i32, %c0_i32_0 : i32, i32
  }
  func.func @transform_4(%arg0: i32) -> (i32, i32) {
    %c0_i32 = arith.constant 0 : i32
    %c0_i32_0 = arith.constant 0 : i32
    %c0_i32_1 = arith.constant 0 : i32
    return %c0_i32, %c0_i32_0 : i32, i32
  }
  func.func @transform_5(%arg0: i32) -> (i32, i32) {
    %c0_i32 = arith.constant 0 : i32
    %c0_i32_0 = arith.constant 0 : i32
    %c0_i32_1 = arith.constant 0 : i32
    return %c0_i32, %c0_i32_0 : i32, i32
  }
  func.func @transform_6(%arg0: i32) -> (i32, i32) {
    %c0_i32 = arith.constant 0 : i32
    %c0_i32_0 = arith.constant 0 : i32
    %c0_i32_1 = arith.constant 0 : i32
    return %c0_i32, %c0_i32_0 : i32, i32
  }
  func.func @transform_7(%arg0: i32) -> (i32, i32) {
    %c0_i32 = arith.constant 0 : i32
    %c0_i32_0 = arith.constant 0 : i32
    return %arg0, %c0_i32 : i32, i32
  }
}

</mosaic_0001>

<bundles_post_ra>
// kernel: network_forward.1
= control target key start
LH: loop header
LB: loop body
LE: loop exit
PB: predicated region body
PF: predicated region fallthrough
CT: control target
= control target key end

     0   :  { %12 = vsyncpa [#allocation3], 0  ;;  %s4007_s0 = inlined_call_operand.vmem [shape: f32[2,128], index: 0, kind: input, shape index: {}]   ;;  %s4008_s1 = inlined_call_operand.hbm [shape: bf16[128,1024], index: 1, kind: input, shape index: {}]   ;;  %s4009_s2 = inlined_call_operand.vmem [shape: f32[1,1024], index: 2, kind: input, shape index: {}]   ;;  %s4010_s3 = inlined_call_operand.hbm [shape: bf16[1024,512], index: 3, kind: input, shape index: {}]   ;;  %s4011_s4 = inlined_call_operand.vmem [shape: f32[1,512], index: 4, kind: input, shape index: {}]   ;;  %s4012_s5 = inlined_call_operand.hbm [shape: bf16[512,128], index: 5, kind: input, shape index: {}]   ;;  %s4013_s6 = inlined_call_operand.vmem [shape: f32[1,128], index: 6, kind: input, shape index: {}]   ;;  %s4014_s7 = inlined_call_operand.hbm [shape: f32[2,128], index: 7, kind: output, shape index: {}]  }
   0x1   :  { %13 = vsyncpa [#allocation6], 0 }
   0x2   :  { %14 = vsyncpa [#allocation4], 0  ;;  %s3844_s24 = smov [#allocation5]  }
   0x3   :  { %s36_s25 = sshll.u32 %s3844_s24, 4  ;;  %s37_s25 = int_to_ptr.vmem [resolvable:$true] %s36_s25 }
   0x4   :  { %s3766_s26 = scalar_lea.vmem %s37_s25, 32768  ;;  %p3771_p1 = scmp.lt.s32.totalorder %s37_s25, %s37_s25 }
   0x5   :  { %p3767_p0 = scmp.ne.s32.totalorder %s37_s25, %s3766_s26  ;;  %p3772_p2 = scmp.lt.s32.totalorder %s3766_s26, %s3766_s26 }
   0x7   :  { %p3773_p3 = por %p3772_p2, %p3771_p1 }
   0x9   :  { %p3774_p4 = pnand %p3773_p3, %p3767_p0 }
   0xb   :  { %3777 = shalt.err (!%p3774_p4)
}
   0xc   :  { %s3845_s27 = smov 256   ;;  %s3846_s28 = smov 16  }
   0xd   :  { %42 = dma.hbm_to_vmem [thread:$0]  %s4010_s3, 32768, %s37_s25, [#allocation6], %s3845_s27, %s3845_s27, %s3846_s28  }
   0xe   :  { %s3847_s8 = smov [#allocation2]  }
   0xf   :  { %s22_s9 = sshll.u32 %s3847_s8, 4  ;;  %s23_s9 = int_to_ptr.vmem [resolvable:$true] %s22_s9 }
  0x10   :  { %s3786_s10 = scalar_lea.vmem %s23_s9, 8192  ;;  %p3791_p6 = scmp.lt.s32.totalorder %s23_s9, %s23_s9 }
  0x11   :  { %p3787_p5 = scmp.ne.s32.totalorder %s23_s9, %s3786_s10  ;;  %p3792_p7 = scmp.lt.s32.totalorder %s3786_s10, %s3786_s10 }
  0x13   :  { %p3793_p8 = por %p3792_p7, %p3791_p6 }
  0x15   :  { %p3794_p9 = pnand %p3793_p8, %p3787_p5 }
  0x17   :  { %3797 = shalt.err (!%p3794_p9)
}
  0x18   :  { %s3848_s11 = smov 512   ;;  %s3849_s12 = smov 32  }
  0x19   :  { %28 = dma.hbm_to_vmem [thread:$0]  %s4008_s1, 8192, %s23_s9, [#allocation3], %s3848_s11, %s3848_s11, %s3849_s12  }
  0x1a   :  { %s3850_s15 = smov [#allocation7]  }
  0x1b   :  { %s50_s16 = sshll.u32 %s3850_s15, 4  ;;  %s51_s16 = int_to_ptr.vmem [resolvable:$true] %s50_s16 }
  0x1c   :  { %s3806_s3 = scalar_lea.vmem %s51_s16, 4096  ;;  %p3811_p11 = scmp.lt.s32.totalorder %s51_s16, %s51_s16 }
  0x1d   :  { %p3807_p10 = scmp.ne.s32.totalorder %s51_s16, %s3806_s3  ;;  %p3812_p12 = scmp.lt.s32.totalorder %s3806_s3, %s3806_s3 }
  0x1f   :  { %p3813_p13 = por %p3812_p12, %p3811_p11 }
  0x21   :  { %p3814_p0 = pnand %p3813_p13, %p3807_p10 }
  0x23   :  { %3817 = shalt.err (!%p3814_p0)
}
  0x24   :  { %s3851_s17 = smov 64   ;;  %s3852_s18 = smov 4  }
  0x25   :  { %56 = dma.hbm_to_vmem [thread:$0]  %s4012_s5, 4096, %s51_s16, [#allocation6], %s3851_s17, %s3851_s17, %s3852_s18  }
  0x26   :  { %3838 = dma.done.wait [#allocation3], 8192  }
  0x27   :  { %3839 = vsyncadd [#allocation3], 4294959104 }
  0x28   :  { %3840 = dma.done.wait [#allocation6], 36864  }
  0x29   :  { %3841 = vsyncadd [#allocation6], 4294930432  ;;  %v3853_v0 = vmov 0   ;;  %v127_v1 = vld [vmem:[#allocation2 + $0x1c0] sm:$0xff]  ;;  %v128_v3 = vld [vmem:[#allocation2 + $0x1c8] sm:$0xff] }
  0x2a   :  { %529 = vmatprep.mubr.bf16.mxu0 %v3853_v0  ;;  %570 = vmatprep.mubr.bf16.mxu1 %v3853_v0  ;;  %v131_v2 = vld [vmem:[#allocation2 + $0x1e0] sm:$0xff]  ;;  %v132_v5 = vld [vmem:[#allocation2 + $0x1e8] sm:$0xff]  ;;  %v129_v62 = vld [vmem:[#allocation2 + $0x1d0] sm:$0xff] }
  0x2b   :  { %v2990_v4 = vcombine.high %v127_v1, %v131_v2  ;;  %v2989_v6 = vcombine.low %v127_v1, %v131_v2  ;;  %v119_v7 = vld [vmem:[#allocation2 + $0x180] sm:$0xff]  ;;  %v2992_v9 = vcombine.high %v128_v3, %v132_v5  ;;  %v2991_v10 = vcombine.low %v128_v3, %v132_v5  ;;  %v120_v12 = vld [vmem:[#allocation2 + $0x188] sm:$0xff]  ;;  %v133_v1 = vld [vmem:[#allocation2 + $0x1f0] sm:$0xff] }
  0x2c   :  { %v123_v8 = vld [vmem:[#allocation2 + $0x1a0] sm:$0xff]  ;;  %v124_v13 = vld [vmem:[#allocation2 + $0x1a8] sm:$0xff]  ;;  %v130_v2 = vld [vmem:[#allocation2 + $0x1d8] sm:$0xff] }
  0x2d   :  { %v2982_v11 = vcombine.high %v119_v7, %v123_v8  ;;  %v111_v14 = vld [vmem:[#allocation2 + $0x140] sm:$0xff]  ;;  %497 = vmatprep.subr.bf16.mxu0 %v2990_v4  ;;  %v2984_v15 = vcombine.high %v120_v12, %v124_v13  ;;  %v112_v17 = vld [vmem:[#allocation2 + $0x148] sm:$0xff]  ;;  %538 = vmatprep.subr.bf16.mxu1 %v2992_v9  ;;  %v2981_v19 = vcombine.low %v119_v7, %v123_v8  ;;  %v134_v3 = vld [vmem:[#allocation2 + $0x1f8] sm:$0xff] }
  0x2e   :  { %v115_v16 = vld [vmem:[#allocation2 + $0x160] sm:$0xff]  ;;  %v116_v18 = vld [vmem:[#allocation2 + $0x168] sm:$0xff]  ;;  %498 = vmatpush1.bf16.msra.mxu0 %v2989_v6  ;;  %539 = vmatpush1.bf16.msra.mxu1 %v2991_v10  ;;  %v2983_v20 = vcombine.low %v120_v12, %v124_v13  ;;  %v2994_v7 = vcombine.high %v129_v62, %v133_v1  ;;  %v121_v8 = vld [vmem:[#allocation2 + $0x190] sm:$0xff]  ;;  %v2996_v9 = vcombine.high %v130_v2, %v134_v3 }
  0x2f   :  { %499 = vmatprep.subr.bf16.mxu0 %v2982_v11  ;;  %v2974_v21 = vcombine.high %v111_v14, %v115_v16  ;;  %540 = vmatprep.subr.bf16.mxu1 %v2984_v15  ;;  %v2976_v22 = vcombine.high %v112_v17, %v116_v18  ;;  %v103_v23 = vld [vmem:[#allocation2 + $0x100] sm:$0xff]  ;;  %v104_v25 = vld [vmem:[#allocation2 + $0x108] sm:$0xff]  ;;  %v2973_v27 = vcombine.low %v111_v14, %v115_v16  ;;  %v125_v10 = vld [vmem:[#allocation2 + $0x1b0] sm:$0xff] }
  0x30   :  { %v107_v24 = vld [vmem:[#allocation2 + $0x120] sm:$0xff]  ;;  %v108_v26 = vld [vmem:[#allocation2 + $0x128] sm:$0xff]  ;;  %v2975_v28 = vcombine.low %v112_v17, %v116_v18  ;;  %v122_v11 = vld [vmem:[#allocation2 + $0x198] sm:$0xff]  ;;  %v2993_v14 = vcombine.low %v129_v62, %v133_v1  ;;  %v2995_v15 = vcombine.low %v130_v2, %v134_v3  ;;  %v2986_v16 = vcombine.high %v121_v8, %v125_v10 }
  0x31   :  { %v2966_v29 = vcombine.high %v103_v23, %v107_v24  ;;  %v2968_v30 = vcombine.high %v104_v25, %v108_v26  ;;  %v95_v31 = vld [vmem:[#allocation2 + $0xc0] sm:$0xff]  ;;  %v96_v33 = vld [vmem:[#allocation2 + $0xc8] sm:$0xff]  ;;  %v2965_v35 = vcombine.low %v103_v23, %v107_v24  ;;  %v2967_v36 = vcombine.low %v104_v25, %v108_v26  ;;  %v126_v13 = vld [vmem:[#allocation2 + $0x1b8] sm:$0xff] }
  0x32   :  { %500 = vmatpush1.bf16.msra.mxu0 %v2981_v19  ;;  %541 = vmatpush1.bf16.msra.mxu1 %v2983_v20  ;;  %v99_v32 = vld [vmem:[#allocation2 + $0xe0] sm:$0xff]  ;;  %v100_v34 = vld [vmem:[#allocation2 + $0xe8] sm:$0xff]  ;;  %v113_v17 = vld [vmem:[#allocation2 + $0x150] sm:$0xff]  ;;  %v2988_v18 = vcombine.high %v122_v11, %v126_v13  ;;  %v2987_v23 = vcombine.low %v122_v11, %v126_v13 }
  0x33   :  { %501 = vmatprep.subr.bf16.mxu0 %v2974_v21  ;;  %542 = vmatprep.subr.bf16.mxu1 %v2976_v22  ;;  %v2958_v37 = vcombine.high %v95_v31, %v99_v32  ;;  %v2960_v38 = vcombine.high %v96_v33, %v100_v34  ;;  %v87_v39 = vld [vmem:[#allocation2 + $0x80] sm:$0xff]  ;;  %v88_v41 = vld [vmem:[#allocation2 + $0x88] sm:$0xff]  ;;  %v2957_v43 = vcombine.low %v95_v31, %v99_v32  ;;  %v117_v19 = vld [vmem:[#allocation2 + $0x170] sm:$0xff] }
  0x34   :  { %v91_v40 = vld [vmem:[#allocation2 + $0xa0] sm:$0xff]  ;;  %v92_v42 = vld [vmem:[#allocation2 + $0xa8] sm:$0xff]  ;;  %v2959_v44 = vcombine.low %v96_v33, %v100_v34  ;;  %v114_v20 = vld [vmem:[#allocation2 + $0x158] sm:$0xff]  ;;  %v2985_v22 = vcombine.low %v121_v8, %v125_v10  ;;  %v2978_v24 = vcombine.high %v113_v17, %v117_v19 }
  0x35   :  { %v2950_v45 = vcombine.high %v87_v39, %v91_v40  ;;  %v2952_v46 = vcombine.high %v88_v41, %v92_v42  ;;  %v79_v47 = vld [vmem:[#allocation2 + $0x40] sm:$0xff]  ;;  %v80_v49 = vld [vmem:[#allocation2 + $0x48] sm:$0xff]  ;;  %v2949_v51 = vcombine.low %v87_v39, %v91_v40  ;;  %v2951_v52 = vcombine.low %v88_v41, %v92_v42  ;;  %v118_v21 = vld [vmem:[#allocation2 + $0x178] sm:$0xff] }
  0x36   :  { %502 = vmatpush1.bf16.msra.mxu0 %v2973_v27  ;;  %543 = vmatpush1.bf16.msra.mxu1 %v2975_v28  ;;  %v83_v48 = vld [vmem:[#allocation2 + $0x60] sm:$0xff]  ;;  %v84_v50 = vld [vmem:[#allocation2 + $0x68] sm:$0xff]  ;;  %v105_v25 = vld [vmem:[#allocation2 + $0x110] sm:$0xff]  ;;  %v2980_v26 = vcombine.high %v114_v20, %v118_v21  ;;  %v2979_v31 = vcombine.low %v114_v20, %v118_v21 }
  0x37   :  { %503 = vmatprep.subr.bf16.mxu0 %v2966_v29  ;;  %544 = vmatprep.subr.bf16.mxu1 %v2968_v30  ;;  %v2942_v53 = vcombine.high %v79_v47, %v83_v48  ;;  %v71_v54 = vld [vmem:[#allocation2] sm:$0xff]  ;;  %v2944_v55 = vcombine.high %v80_v49, %v84_v50  ;;  %v72_v57 = vld [vmem:[#allocation2 + $0x8] sm:$0xff]  ;;  %v2941_v59 = vcombine.low %v79_v47, %v83_v48  ;;  %v109_v27 = vld [vmem:[#allocation2 + $0x130] sm:$0xff] }
  0x38   :  { %v75_v56 = vld [vmem:[#allocation2 + $0x20] sm:$0xff]  ;;  %v76_v58 = vld [vmem:[#allocation2 + $0x28] sm:$0xff]  ;;  %v2943_v60 = vcombine.low %v80_v49, %v84_v50  ;;  %v106_v28 = vld [vmem:[#allocation2 + $0x118] sm:$0xff]  ;;  %v2977_v30 = vcombine.low %v113_v17, %v117_v19  ;;  %v2970_v32 = vcombine.high %v105_v25, %v109_v27 }
  0x39   :  { %v2934_v61 = vcombine.high %v71_v54, %v75_v56  ;;  %v2936_v63 = vcombine.high %v72_v57, %v76_v58  ;;  %v2933_v4 = vcombine.low %v71_v54, %v75_v56  ;;  %v69_v5 = vld [vmem:[%s4007_s0] sm:$0xff]  ;;  %v2935_v6 = vcombine.low %v72_v57, %v76_v58  ;;  %v110_v29 = vld [vmem:[#allocation2 + $0x138] sm:$0xff]  ;;  %v97_v33 = vld [vmem:[#allocation2 + $0xd0] sm:$0xff] }
  0x3a   :  { %504 = vmatpush1.bf16.msra.mxu0 %v2965_v35  ;;  %545 = vmatpush1.bf16.msra.mxu1 %v2967_v36  ;;  %v3911_v12 = vpack.c.bf16 %v69_v5, %v69_v5  ;;  %v2972_v34 = vcombine.high %v106_v28, %v110_v29  ;;  %v101_v35 = vld [vmem:[#allocation2 + $0xf0] sm:$0xff]  ;;  %v98_v36 = vld [vmem:[#allocation2 + $0xd8] sm:$0xff]  ;;  %v2971_v39 = vcombine.low %v106_v28, %v110_v29 }
  0x3b   :  { %505 = vmatprep.subr.bf16.mxu0 %v2958_v37  ;;  %546 = vmatprep.subr.bf16.mxu1 %v2960_v38  ;;  %v102_v37 = vld [vmem:[#allocation2 + $0xf8] sm:$0xff]  ;;  %v2969_v38 = vcombine.low %v105_v25, %v109_v27  ;;  %v2962_v40 = vcombine.high %v97_v33, %v101_v35  ;;  %v89_v41 = vld [vmem:[#allocation2 + $0x90] sm:$0xff] }
  0x3c   :  { %v93_v42 = vld [vmem:[#allocation2 + $0xb0] sm:$0xff] }
  0x3d   :  { %v2954_v47 = vcombine.high %v89_v41, %v93_v42  ;;  %v81_v48 = vld [vmem:[#allocation2 + $0x50] sm:$0xff] }
  0x3e   :  { %506 = vmatpush1.bf16.msra.mxu0 %v2957_v43  ;;  %547 = vmatpush1.bf16.msra.mxu1 %v2959_v44  ;;  %v90_v43 = vld [vmem:[#allocation2 + $0x98] sm:$0xff]  ;;  %v85_v50 = vld [vmem:[#allocation2 + $0x70] sm:$0xff] }
  0x3f   :  { %507 = vmatprep.subr.bf16.mxu0 %v2950_v45  ;;  %548 = vmatprep.subr.bf16.mxu1 %v2952_v46  ;;  %v94_v44 = vld [vmem:[#allocation2 + $0xb8] sm:$0xff]  ;;  %v2961_v45 = vcombine.low %v97_v33, %v101_v35  ;;  %v2963_v46 = vcombine.low %v98_v36, %v102_v37  ;;  %v73_v56 = vld [vmem:[#allocation2 + $0x10] sm:$0xff] }
  0x40   :  { %v2956_v49 = vcombine.high %v90_v43, %v94_v44  ;;  %v2955_v54 = vcombine.low %v90_v43, %v94_v44  ;;  %v77_v58 = vld [vmem:[#allocation2 + $0x30] sm:$0xff] }
  0x41   :  { %v3344_v2 = vld [vmem:[#allocation5 + $0xe4] ss:$16 sps:$4 sm:$0xff]   ;;  %v2937_v3 = vcombine.low %v73_v56, %v77_v58  ;;  %v3348_v10 = vld [vmem:[#allocation5 + $0xc0] ss:$16 sps:$4 sm:$0xff]  }
  0x42   :  { %508 = vmatpush1.bf16.msra.mxu0 %v2949_v51  ;;  %549 = vmatpush1.bf16.msra.mxu1 %v2951_v52  ;;  %v82_v51 = vld [vmem:[#allocation2 + $0x58] sm:$0xff]  ;;  %v3350_v8 = vld [vmem:[#allocation5 + $0xc4] ss:$16 sps:$4 sm:$0xff]   ;;  %v3351_v11 = vld [vmem:[#allocation5 + $0x2c0] ss:$16 sps:$4 sm:$0xff]  }
  0x43   :  { %509 = vmatprep.subr.bf16.mxu0 %v2942_v53  ;;  %550 = vmatprep.subr.bf16.mxu1 %v2944_v55  ;;  %v86_v52 = vld [vmem:[#allocation2 + $0x78] sm:$0xff]  ;;  %v2953_v53 = vcombine.low %v89_v41, %v93_v42  ;;  %v2946_v55 = vcombine.high %v81_v48, %v85_v50  ;;  %v3356_v13 = vld [vmem:[#allocation5 + $0xa4] ss:$16 sps:$4 sm:$0xff]   ;;  %v3360_v19 = vld [vmem:[#allocation5 + $0x80] ss:$16 sps:$4 sm:$0xff]  }
  0x44   :  { %v2948_v57 = vcombine.high %v82_v51, %v86_v52  ;;  %v2947_v62 = vcombine.low %v82_v51, %v86_v52  ;;  %v3362_v17 = vld [vmem:[#allocation5 + $0x84] ss:$16 sps:$4 sm:$0xff]   ;;  %v3363_v20 = vld [vmem:[#allocation5 + $0x280] ss:$16 sps:$4 sm:$0xff]  }
  0x45   :  { %v3368_v21 = vld [vmem:[#allocation5 + $0x64] ss:$16 sps:$4 sm:$0xff]   ;;  %v3375_v27 = vld [vmem:[#allocation5 + $0x240] ss:$16 sps:$4 sm:$0xff]  }
  0x46   :  { %510 = vmatpush1.bf16.msra.mxu0 %v2941_v59  ;;  %551 = vmatpush1.bf16.msra.mxu1 %v2943_v60  ;;  %v74_v59 = vld [vmem:[#allocation2 + $0x18] sm:$0xff]  ;;  %v3377_v25 = vld [vmem:[#allocation5 + $0x244] ss:$16 sps:$4 sm:$0xff]   ;;  %v3387_v35 = vld [vmem:[#allocation5 + $0x200] ss:$16 sps:$4 sm:$0xff]  }
  0x47   :  { %511 = vmatprep.subr.bf16.mxu0 %v2934_v61  ;;  %552 = vmatprep.subr.bf16.mxu1 %v2936_v63  ;;  %v78_v60 = vld [vmem:[#allocation2 + $0x38] sm:$0xff]  ;;  %v2945_v61 = vcombine.low %v81_v48, %v85_v50  ;;  %v2938_v63 = vcombine.high %v73_v56, %v77_v58  ;;  %v3380_v28 = vld [vmem:[#allocation5 + $0x24] ss:$16 sps:$4 sm:$0xff]   ;;  %v3399_v42 = vld [vmem:[#allocation5 + $0x3c0] ss:$16 sps:$4 sm:$0xff]  }
  0x48   :  { %v2940_v1 = vcombine.high %v74_v59, %v78_v60  ;;  %v2939_v5 = vcombine.low %v74_v59, %v78_v60  ;;  %v3383_v29 = vld [vmem:[#allocation5 + $0x224] ss:$16 sps:$4 sm:$0xff]   ;;  %v3411_v50 = vld [vmem:[#allocation5 + $0x380] ss:$16 sps:$4 sm:$0xff]  }
  0x49   :  { %v3389_v33 = vld [vmem:[#allocation5 + $0x204] ss:$16 sps:$4 sm:$0xff]   ;;  %v3423_v58 = vld [vmem:[#allocation5 + $0x340] ss:$16 sps:$4 sm:$0xff]  }
  0x4a   :  { %512 = vmatpush1.bf16.msra.mxu0 %v2933_v4  ;;  %553 = vmatpush1.bf16.msra.mxu1 %v2935_v6  ;;  %v3347_v4 = vld [vmem:[#allocation5 + $0x2e4] ss:$16 sps:$4 sm:$0xff]   ;;  %v3342_v6 = vld [vmem:[#allocation5 + $0xe0] ss:$16 sps:$4 sm:$0xff]  }
  0x4b   :  { %579 = vmatprep.subr.bf16.mxu0 %v2994_v7  ;;  %620 = vmatprep.subr.bf16.mxu1 %v2996_v9  ;;  %v3345_v7 = vld [vmem:[#allocation5 + $0x2e0] ss:$16 sps:$4 sm:$0xff]   ;;  %v3353_v9 = vld [vmem:[#allocation5 + $0x2c4] ss:$16 sps:$4 sm:$0xff]  }
  0x4c   :  { %v3401_v41 = vld [vmem:[#allocation5 + $0x3c4] ss:$16 sps:$4 sm:$0xff]  }
  0x4d   :  { %530 = vmatmul.mubr.bf16.vlgmr.msra.gmra.mxu0 %v3911_v12  ;;  %571 = vmatmul.mubr.bf16.vlgmr.msra.gmra.mxu1 %v3911_v12  ;;  %v3404_v43 = vld [vmem:[#allocation5 + $0x1a4] ss:$16 sps:$4 sm:$0xff]  }
  0x4e   :  { %580 = vmatpush1.bf16.msra.mxu0 %v2993_v14  ;;  %621 = vmatpush1.bf16.msra.mxu1 %v2995_v15  ;;  %v3359_v14 = vld [vmem:[#allocation5 + $0x2a4] ss:$16 sps:$4 sm:$0xff]   ;;  %v3354_v15 = vld [vmem:[#allocation5 + $0xa0] ss:$16 sps:$4 sm:$0xff]  }
  0x4f   :  { %581 = vmatprep.subr.bf16.mxu0 %v2986_v16  ;;  %622 = vmatprep.subr.bf16.mxu1 %v2988_v18  ;;  %v3357_v16 = vld [vmem:[#allocation5 + $0x2a0] ss:$16 sps:$4 sm:$0xff]   ;;  %v3365_v18 = vld [vmem:[#allocation5 + $0x284] ss:$16 sps:$4 sm:$0xff]  }
  0x50   :  { %611 = vmatprep.mubr.bf16.mxu0 %v3853_v0  ;;  %652 = vmatprep.mubr.bf16.mxu1 %v3853_v0  ;;  %v2964_v0 = vcombine.high %v98_v36, %v102_v37  ;;  %v3392_v36 = vld [vmem:[#allocation5 + $0x1e4] ss:$16 sps:$4 sm:$0xff]  }
  0x51   :  { %v3395_v37 = vld [vmem:[#allocation5 + $0x3e4] ss:$16 sps:$4 sm:$0xff]  }
  0x52   :  { %582 = vmatpush1.bf16.msra.mxu0 %v2985_v22  ;;  %623 = vmatpush1.bf16.msra.mxu1 %v2987_v23  ;;  %v3371_v22 = vld [vmem:[#allocation5 + $0x264] ss:$16 sps:$4 sm:$0xff]   ;;  %v3369_v23 = vld [vmem:[#allocation5 + $0x260] ss:$16 sps:$4 sm:$0xff]  }
  0x53   :  { %583 = vmatprep.subr.bf16.mxu0 %v2978_v24  ;;  %624 = vmatprep.subr.bf16.mxu1 %v2980_v26  ;;  %v3374_v24 = vld [vmem:[#allocation5 + $0x44] ss:$16 sps:$4 sm:$0xff]   ;;  %v3372_v26 = vld [vmem:[#allocation5 + $0x40] ss:$16 sps:$4 sm:$0xff]  }
  0x54   :  { %v3407_v44 = vld [vmem:[#allocation5 + $0x3a4] ss:$16 sps:$4 sm:$0xff]  }
  0x55   :  { %v3413_v48 = vld [vmem:[#allocation5 + $0x384] ss:$16 sps:$4 sm:$0xff]  }
  0x56   :  { %584 = vmatpush1.bf16.msra.mxu0 %v2977_v30  ;;  %625 = vmatpush1.bf16.msra.mxu1 %v2979_v31  ;;  %v3378_v30 = vld [vmem:[#allocation5 + $0x20] ss:$16 sps:$4 sm:$0xff]   ;;  %v3416_v51 = vld [vmem:[#allocation5 + $0x164] ss:$16 sps:$4 sm:$0xff]  }
  0x57   :  { %585 = vmatprep.subr.bf16.mxu0 %v2970_v32  ;;  %626 = vmatprep.subr.bf16.mxu1 %v2972_v34  ;;  %v3381_v31 = vld [vmem:[#allocation5 + $0x220] ss:$16 sps:$4 sm:$0xff]   ;;  %v3386_v32 = vld [vmem:[#allocation5 + $0x4] ss:$16 sps:$4 sm:$0xff]  }
  0x58   :  { %v3384_v34 = vld [vmem:[#allocation5] ss:$16 sps:$4 sm:$0xff]   ;;  %v3419_v52 = vld [vmem:[#allocation5 + $0x364] ss:$16 sps:$4 sm:$0xff]  }
  0x59   :  { %v3425_v56 = vld [vmem:[#allocation5 + $0x344] ss:$16 sps:$4 sm:$0xff]  }
  0x5a   :  { %586 = vmatpush1.bf16.msra.mxu0 %v2969_v38  ;;  %627 = vmatpush1.bf16.msra.mxu1 %v2971_v39  ;;  %v3390_v38 = vld [vmem:[#allocation5 + $0x1e0] ss:$16 sps:$4 sm:$0xff]   ;;  %v3428_v59 = vld [vmem:[#allocation5 + $0x124] ss:$16 sps:$4 sm:$0xff]  }
  0x5b   :  { %587 = vmatprep.subr.bf16.mxu0 %v2962_v40  ;;  %628 = vmatprep.subr.bf16.mxu1 %v2964_v0  ;;  %v3393_v39 = vld [vmem:[#allocation5 + $0x3e0] ss:$16 sps:$4 sm:$0xff]   ;;  %v3398_v40 = vld [vmem:[#allocation5 + $0x1c4] ss:$16 sps:$4 sm:$0xff]  }
  0x5c   :  { %v3396_v0 = vld [vmem:[#allocation5 + $0x1c0] ss:$16 sps:$4 sm:$0xff]   ;;  %v3431_v60 = vld [vmem:[#allocation5 + $0x324] ss:$16 sps:$4 sm:$0xff]  }
  0x5e   :  { %588 = vmatpush1.bf16.msra.mxu0 %v2961_v45  ;;  %629 = vmatpush1.bf16.msra.mxu1 %v2963_v46  ;;  %v3402_v45 = vld [vmem:[#allocation5 + $0x1a0] ss:$16 sps:$4 sm:$0xff]  }
  0x5f   :  { %589 = vmatprep.subr.bf16.mxu0 %v2954_v47  ;;  %630 = vmatprep.subr.bf16.mxu1 %v2956_v49  ;;  %v3405_v46 = vld [vmem:[#allocation5 + $0x3a0] ss:$16 sps:$4 sm:$0xff]   ;;  %v3410_v47 = vld [vmem:[#allocation5 + $0x184] ss:$16 sps:$4 sm:$0xff]  }
  0x60   :  { %v3408_v49 = vld [vmem:[#allocation5 + $0x180] ss:$16 sps:$4 sm:$0xff]  }
  0x62   :  { %590 = vmatpush1.bf16.msra.mxu0 %v2953_v53  ;;  %631 = vmatpush1.bf16.msra.mxu1 %v2955_v54  ;;  %v3414_v53 = vld [vmem:[#allocation5 + $0x160] ss:$16 sps:$4 sm:$0xff]  }
  0x63   :  { %591 = vmatprep.subr.bf16.mxu0 %v2946_v55  ;;  %632 = vmatprep.subr.bf16.mxu1 %v2948_v57  ;;  %v3417_v54 = vld [vmem:[#allocation5 + $0x360] ss:$16 sps:$4 sm:$0xff]   ;;  %v3422_v55 = vld [vmem:[#allocation5 + $0x144] ss:$16 sps:$4 sm:$0xff]  }
  0x64   :  { %v3420_v57 = vld [vmem:[#allocation5 + $0x140] ss:$16 sps:$4 sm:$0xff]  }
  0x66   :  { %592 = vmatpush1.bf16.msra.mxu0 %v2945_v61  ;;  %633 = vmatpush1.bf16.msra.mxu1 %v2947_v62  ;;  %v3426_v61 = vld [vmem:[#allocation5 + $0x120] ss:$16 sps:$4 sm:$0xff]  }
  0x67   :  { %593 = vmatprep.subr.bf16.mxu0 %v2938_v63  ;;  %634 = vmatprep.subr.bf16.mxu1 %v2940_v1  ;;  %v3429_v62 = vld [vmem:[#allocation5 + $0x320] ss:$16 sps:$4 sm:$0xff]   ;;  %v3434_v63 = vld [vmem:[#allocation5 + $0x104] ss:$16 sps:$4 sm:$0xff]  }
  0x68   :  { %v3437_v1 = vld [vmem:[#allocation5 + $0x304] ss:$16 sps:$4 sm:$0xff]  }
  0x6a   :  { %594 = vmatpush1.bf16.msra.mxu0 %v2937_v3  ;;  %635 = vmatpush1.bf16.msra.mxu1 %v2939_v5  ;;  %v3435_v3 = vld [vmem:[#allocation5 + $0x300] ss:$16 sps:$4 sm:$0xff]   ;;  %v3443_v5 = vld [vmem:[#allocation5 + $0x6e4] ss:$16 sps:$4 sm:$0xff]  }
  0x6b   :  { %2235 = vmatprep.subr.bf16.mxu0 %v3344_v2  ;;  %2276 = vmatprep.subr.bf16.mxu1 %v3347_v4  ;;  %v3432_v2 = vld [vmem:[#allocation5 + $0x100] ss:$16 sps:$4 sm:$0xff]   ;;  %v3440_v4 = vld [vmem:[#allocation5 + $0x4e4] ss:$16 sps:$4 sm:$0xff]  }
  0x6d   :  { %612 = vmatmul.mubr.bf16.vlgmr.msra.gmra.mxu0 %v3911_v12  ;;  %653 = vmatmul.mubr.bf16.vlgmr.msra.gmra.mxu1 %v3911_v12  ;;  %v3366_v12 = vld [vmem:[#allocation5 + $0x60] ss:$16 sps:$4 sm:$0xff]  }
  0x6e   :  { %2236 = vmatpush1.bf16.msra.mxu0 %v3342_v6  ;;  %2277 = vmatpush1.bf16.msra.mxu1 %v3345_v7  ;;  %v137_v6 = vlaneseq }
  0x6f   :  { %2237 = vmatprep.subr.bf16.mxu0 %v3350_v8  ;;  %2278 = vmatprep.subr.bf16.mxu1 %v3353_v9  ;;  %v3925_v9 = vld [vmem:[%s4009_s2] sm:$0xff] }
  0x70   :  { %v3919_v7 = vshrl.u32 %v137_v6, 7 }
  0x72   :  { %2238 = vmatpush1.bf16.msra.mxu0 %v3348_v10  ;;  %2279 = vmatpush1.bf16.msra.mxu1 %v3351_v11  ;;  %v139_v8 = vsub.s32 0, %v3919_v7  ;;  %v147_v10 = vsub.s32 2, %v3919_v7  ;;  %v143_v11 = vsub.s32 1, %v3919_v7 }
  0x73   :  { %2239 = vmatprep.subr.bf16.mxu0 %v3356_v13  ;;  %2280 = vmatprep.subr.bf16.mxu1 %v3359_v14  ;;  %v151_v13 = vsub.s32 3, %v3919_v7 }
  0x74   :  { %v140_v14 = vrot.slane %v3925_v9, %v139_v8 }
  0x76   :  { %2240 = vmatpush1.bf16.msra.mxu0 %v3354_v15  ;;  %2281 = vmatpush1.bf16.msra.mxu1 %v3357_v16  ;;  %v148_v15 = vrot.slane %v3925_v9, %v147_v10  ;;  %v144_v16 = vrot.slane %v3925_v9, %v143_v11 }
  0x77   :  { %2241 = vmatprep.subr.bf16.mxu0 %v3362_v17  ;;  %2282 = vmatprep.subr.bf16.mxu1 %v3365_v18  ;;  %v152_v18 = vrot.slane %v3925_v9, %v151_v13 }
  0x7a   :  { %2242 = vmatpush1.bf16.msra.mxu0 %v3360_v19  ;;  %2283 = vmatpush1.bf16.msra.mxu1 %v3363_v20 }
  0x7b   :  { %2243 = vmatprep.subr.bf16.mxu0 %v3368_v21  ;;  %2284 = vmatprep.subr.bf16.mxu1 %v3371_v22 }
  0x7e   :  { %2244 = vmatpush1.bf16.msra.mxu0 %v3366_v12  ;;  %2285 = vmatpush1.bf16.msra.mxu1 %v3369_v23 }
  0x7f   :  { %2245 = vmatprep.subr.bf16.mxu0 %v3374_v24  ;;  %2286 = vmatprep.subr.bf16.mxu1 %v3377_v25 }
  0x82   :  { %2246 = vmatpush1.bf16.msra.mxu0 %v3372_v26  ;;  %2287 = vmatpush1.bf16.msra.mxu1 %v3375_v27 }
  0x83   :  { %2247 = vmatprep.subr.bf16.mxu0 %v3380_v28  ;;  %2288 = vmatprep.subr.bf16.mxu1 %v3383_v29 }
  0x86   :  { %2248 = vmatpush1.bf16.msra.mxu0 %v3378_v30  ;;  %2289 = vmatpush1.bf16.msra.mxu1 %v3381_v31 }
  0x87   :  { %2249 = vmatprep.subr.bf16.mxu0 %v3386_v32  ;;  %2290 = vmatprep.subr.bf16.mxu1 %v3389_v33 }
  0x8a   :  { %2250 = vmatpush1.bf16.msra.mxu0 %v3384_v34  ;;  %2291 = vmatpush1.bf16.msra.mxu1 %v3387_v35  ;;  %v3438_v35 = vld [vmem:[#allocation5 + $0x4e0] ss:$16 sps:$4 sm:$0xff]  }
  0x8b   :  { %2251 = vmatprep.subr.bf16.mxu0 %v3392_v36  ;;  %2292 = vmatprep.subr.bf16.mxu1 %v3395_v37 }
  0x8e   :  { %2252 = vmatpush2.bf16.msra.mxu0 %v3390_v38  ;;  %2293 = vmatpush2.bf16.msra.mxu1 %v3393_v39  ;;  %v3441_v38 = vld [vmem:[#allocation5 + $0x6e0] ss:$16 sps:$4 sm:$0xff]   ;;  %v3446_v39 = vld [vmem:[#allocation5 + $0x4c4] ss:$16 sps:$4 sm:$0xff]  }
  0x8f   :  { %2253 = vmatprep.subr.bf16.mxu0 %v3398_v40  ;;  %2294 = vmatprep.subr.bf16.mxu1 %v3401_v41  ;;  %v3449_v40 = vld [vmem:[#allocation5 + $0x6c4] ss:$16 sps:$4 sm:$0xff]   ;;  %v3444_v41 = vld [vmem:[#allocation5 + $0x4c0] ss:$16 sps:$4 sm:$0xff]  }
  0x92   :  { %2254 = vmatpush2.bf16.msra.mxu0 %v3396_v0  ;;  %2295 = vmatpush2.bf16.msra.mxu1 %v3399_v42  ;;  %v3447_v0 = vld [vmem:[#allocation5 + $0x6c0] ss:$16 sps:$4 sm:$0xff]   ;;  %v3452_v42 = vld [vmem:[#allocation5 + $0x4a4] ss:$16 sps:$4 sm:$0xff]  }
  0x93   :  { %2255 = vmatprep.subr.bf16.mxu0 %v3404_v43  ;;  %2296 = vmatprep.subr.bf16.mxu1 %v3407_v44  ;;  %v3455_v43 = vld [vmem:[#allocation5 + $0x6a4] ss:$16 sps:$4 sm:$0xff]   ;;  %v3450_v44 = vld [vmem:[#allocation5 + $0x4a0] ss:$16 sps:$4 sm:$0xff]  }
  0x96   :  { %2256 = vmatpush2.bf16.msra.mxu0 %v3402_v45  ;;  %2297 = vmatpush2.bf16.msra.mxu1 %v3405_v46  ;;  %v3453_v45 = vld [vmem:[#allocation5 + $0x6a0] ss:$16 sps:$4 sm:$0xff]   ;;  %v3458_v46 = vld [vmem:[#allocation5 + $0x484] ss:$16 sps:$4 sm:$0xff]  }
  0x97   :  { %2257 = vmatprep.subr.bf16.mxu0 %v3410_v47  ;;  %2298 = vmatprep.subr.bf16.mxu1 %v3413_v48  ;;  %v3461_v47 = vld [vmem:[#allocation5 + $0x684] ss:$16 sps:$4 sm:$0xff]   ;;  %v3456_v48 = vld [vmem:[#allocation5 + $0x480] ss:$16 sps:$4 sm:$0xff]  }
  0x9a   :  { %2258 = vmatpush2.bf16.msra.mxu0 %v3408_v49  ;;  %2299 = vmatpush2.bf16.msra.mxu1 %v3411_v50  ;;  %v3459_v49 = vld [vmem:[#allocation5 + $0x680] ss:$16 sps:$4 sm:$0xff]   ;;  %v3464_v50 = vld [vmem:[#allocation5 + $0x464] ss:$16 sps:$4 sm:$0xff]  }
  0x9b   :  { %2259 = vmatprep.subr.bf16.mxu0 %v3416_v51  ;;  %2300 = vmatprep.subr.bf16.mxu1 %v3419_v52  ;;  %v3467_v51 = vld [vmem:[#allocation5 + $0x664] ss:$16 sps:$4 sm:$0xff]   ;;  %v3462_v52 = vld [vmem:[#allocation5 + $0x460] ss:$16 sps:$4 sm:$0xff]  }
  0x9e   :  { %2260 = vmatpush2.bf16.msra.mxu0 %v3414_v53  ;;  %2301 = vmatpush2.bf16.msra.mxu1 %v3417_v54  ;;  %v3465_v53 = vld [vmem:[#allocation5 + $0x660] ss:$16 sps:$4 sm:$0xff]   ;;  %v3470_v54 = vld [vmem:[#allocation5 + $0x444] ss:$16 sps:$4 sm:$0xff]  }
  0x9f   :  { %2261 = vmatprep.subr.bf16.mxu0 %v3422_v55  ;;  %2302 = vmatprep.subr.bf16.mxu1 %v3425_v56  ;;  %v3473_v55 = vld [vmem:[#allocation5 + $0x644] ss:$16 sps:$4 sm:$0xff]   ;;  %v3468_v56 = vld [vmem:[#allocation5 + $0x440] ss:$16 sps:$4 sm:$0xff]  }
  0xa2   :  { %2262 = vmatpush2.bf16.msra.mxu0 %v3420_v57  ;;  %2303 = vmatpush2.bf16.msra.mxu1 %v3423_v58  ;;  %v159_v57 = vsub.s32 5, %v3919_v7  ;;  %v3471_v58 = vld [vmem:[#allocation5 + $0x640] ss:$16 sps:$4 sm:$0xff]  }
  0xa3   :  { %2263 = vmatprep.subr.bf16.mxu0 %v3428_v59  ;;  %2304 = vmatprep.subr.bf16.mxu1 %v3431_v60  ;;  %v3476_v59 = vld [vmem:[#allocation5 + $0x424] ss:$16 sps:$4 sm:$0xff]   ;;  %v167_v60 = vsub.s32 7, %v3919_v7 }
  0xa6   :  { %2264 = vmatpush2.bf16.msra.mxu0 %v3426_v61  ;;  %2305 = vmatpush2.bf16.msra.mxu1 %v3429_v62  ;;  %v3479_v61 = vld [vmem:[#allocation5 + $0x624] ss:$16 sps:$4 sm:$0xff]   ;;  %v3474_v62 = vld [vmem:[#allocation5 + $0x420] ss:$16 sps:$4 sm:$0xff]  }
  0xa7   :  { %2265 = vmatprep.subr.bf16.mxu0 %v3434_v63  ;;  %2306 = vmatprep.subr.bf16.mxu1 %v3437_v1  ;;  %v160_v63 = vrot.slane %v3925_v9, %v159_v57  ;;  %v3477_v1 = vld [vmem:[#allocation5 + $0x620] ss:$16 sps:$4 sm:$0xff]  }
  0xa8   :  { %v3519_v57 = vld [vmem:[#allocation5 + $0x740] ss:$16 sps:$4 sm:$0xff]  }
  0xaa   :  { %2266 = vmatpush2.bf16.msra.mxu0 %v3432_v2  ;;  %2307 = vmatpush2.bf16.msra.mxu1 %v3435_v3  ;;  %v3482_v2 = vld [vmem:[#allocation5 + $0x404] ss:$16 sps:$4 sm:$0xff]  }
  0xab   :  { %2317 = vmatprep.subr.bf16.mxu0 %v3440_v4  ;;  %2358 = vmatprep.subr.bf16.mxu1 %v3443_v5  ;;  %v168_v4 = vrot.slane %v3925_v9, %v167_v60  ;;  %v3485_v5 = vld [vmem:[#allocation5 + $0x604] ss:$16 sps:$4 sm:$0xff]  }
 0x10d   :  { %v531_v17 = vpop.f32.mrf.mxu0  ;;  %v572_v20 = vpop.f32.mrf.mxu1 }
 0x10e   :  { %v532_v19 = vadd.f32 %v531_v17, %v140_v14  ;;  %v573_v21 = vadd.f32 %v572_v20, %v148_v15  ;;  %v3480_v15 = vld [vmem:[#allocation5 + $0x400] ss:$16 sps:$4 sm:$0xff]  }
 0x10f   :  { %v533_v22 = vpop.f32.mrf.mxu0  ;;  %v574_v23 = vpop.f32.mrf.mxu1 }
 0x110   :  { %v534_v12 = vadd.f32 %v533_v22, %v144_v16  ;;  %v661_v24 = vmax.f32 %v532_v19, 0.0  ;;  %v663_v25 = vmax.f32 %v573_v21, 0.0  ;;  %v575_v26 = vadd.f32 %v574_v23, %v152_v18  ;;  %v3483_v18 = vld [vmem:[#allocation5 + $0x600] ss:$16 sps:$4 sm:$0xff]   ;;  %v3488_v19 = vld [vmem:[#allocation5 + $0x5e4] ss:$16 sps:$4 sm:$0xff]  }
 0x111   :  { %v535_v27 = vpop.f32.mrf.mxu0  ;;  %v576_v29 = vpop.f32.mrf.mxu1  ;;  %v3491_v22 = vld [vmem:[#allocation5 + $0x7e4] ss:$16 sps:$4 sm:$0xff]  }
 0x112   :  { %v662_v28 = vmax.f32 %v534_v12, 0.0  ;;  %v664_v30 = vmax.f32 %v575_v26, 0.0  ;;  %v3942_v32 = vpack.c.bf16 %v663_v25, %v663_v25  ;;  %v3946_v36 = vpack.c.bf16 %v661_v24, %v661_v24  ;;  %v3486_v26 = vld [vmem:[#allocation5 + $0x5e0] ss:$16 sps:$4 sm:$0xff]  }
 0x113   :  { %v536_v31 = vpop.f32.mrf.mxu0  ;;  %v577_v34 = vpop.f32.mrf.mxu1  ;;  %v3489_v29 = vld [vmem:[#allocation5 + $0x7e0] ss:$16 sps:$4 sm:$0xff]  }
 0x114   :  { %v3944_v33 = vpack.c.bf16 %v662_v28, %v662_v28  ;;  %v3948_v37 = vpack.c.bf16 %v664_v30, %v664_v30  ;;  %v3494_v30 = vld [vmem:[#allocation5 + $0x5c4] ss:$16 sps:$4 sm:$0xff]  }
 0x115   :  { %v3497_v34 = vld [vmem:[#allocation5 + $0x7c4] ss:$16 sps:$4 sm:$0xff]  }
 0x116   :  { %2267 = vmatprep.mubr.bf16.mxu0 %v3944_v33  ;;  %2308 = vmatprep.mubr.bf16.mxu1 %v3948_v37 }
 0x117   :  { %2268 = vmatmul.mubr.bf16.vlgmr.msra.gmra.mxu0 %v3946_v36  ;;  %2309 = vmatmul.mubr.bf16.vlgmr.msra.gmra.mxu1 %v3942_v32 }
 0x118   :  { %2318 = vmatpush1.bf16.msra.mxu0 %v3438_v35  ;;  %2359 = vmatpush1.bf16.msra.mxu1 %v3441_v38  ;;  %v3492_v35 = vld [vmem:[#allocation5 + $0x5c0] ss:$16 sps:$4 sm:$0xff]  }
 0x119   :  { %2319 = vmatprep.subr.bf16.mxu0 %v3446_v39  ;;  %2360 = vmatprep.subr.bf16.mxu1 %v3449_v40  ;;  %v3495_v38 = vld [vmem:[#allocation5 + $0x7c0] ss:$16 sps:$4 sm:$0xff]   ;;  %v3500_v39 = vld [vmem:[#allocation5 + $0x5a4] ss:$16 sps:$4 sm:$0xff]  }
 0x11a   :  { %v3503_v40 = vld [vmem:[#allocation5 + $0x7a4] ss:$16 sps:$4 sm:$0xff]  }
 0x11c   :  { %2320 = vmatpush1.bf16.msra.mxu0 %v3444_v41  ;;  %2361 = vmatpush1.bf16.msra.mxu1 %v3447_v0  ;;  %v3498_v41 = vld [vmem:[#allocation5 + $0x5a0] ss:$16 sps:$4 sm:$0xff]  }
 0x11d   :  { %2321 = vmatprep.subr.bf16.mxu0 %v3452_v42  ;;  %2362 = vmatprep.subr.bf16.mxu1 %v3455_v43  ;;  %v3501_v0 = vld [vmem:[#allocation5 + $0x7a0] ss:$16 sps:$4 sm:$0xff]   ;;  %v3506_v42 = vld [vmem:[#allocation5 + $0x584] ss:$16 sps:$4 sm:$0xff]  }
 0x11e   :  { %v3509_v43 = vld [vmem:[#allocation5 + $0x784] ss:$16 sps:$4 sm:$0xff]  }
 0x120   :  { %2322 = vmatpush1.bf16.msra.mxu0 %v3450_v44  ;;  %2363 = vmatpush1.bf16.msra.mxu1 %v3453_v45  ;;  %v3504_v44 = vld [vmem:[#allocation5 + $0x580] ss:$16 sps:$4 sm:$0xff]  }
 0x121   :  { %2323 = vmatprep.subr.bf16.mxu0 %v3458_v46  ;;  %2364 = vmatprep.subr.bf16.mxu1 %v3461_v47  ;;  %v3507_v45 = vld [vmem:[#allocation5 + $0x780] ss:$16 sps:$4 sm:$0xff]   ;;  %v3512_v46 = vld [vmem:[#allocation5 + $0x564] ss:$16 sps:$4 sm:$0xff]  }
 0x122   :  { %v3515_v47 = vld [vmem:[#allocation5 + $0x764] ss:$16 sps:$4 sm:$0xff]  }
 0x124   :  { %2324 = vmatpush1.bf16.msra.mxu0 %v3456_v48  ;;  %2365 = vmatpush1.bf16.msra.mxu1 %v3459_v49  ;;  %v3510_v48 = vld [vmem:[#allocation5 + $0x560] ss:$16 sps:$4 sm:$0xff]   ;;  %v163_v49 = vsub.s32 6, %v3919_v7 }
 0x125   :  { %2325 = vmatprep.subr.bf16.mxu0 %v3464_v50  ;;  %2366 = vmatprep.subr.bf16.mxu1 %v3467_v51  ;;  %v3513_v50 = vld [vmem:[#allocation5 + $0x760] ss:$16 sps:$4 sm:$0xff]   ;;  %v155_v51 = vsub.s32 4, %v3919_v7 }
 0x128   :  { %2326 = vmatpush1.bf16.msra.mxu0 %v3462_v52  ;;  %2367 = vmatpush1.bf16.msra.mxu1 %v3465_v53  ;;  %v3518_v52 = vld [vmem:[#allocation5 + $0x544] ss:$16 sps:$4 sm:$0xff]  }
 0x129   :  { %2327 = vmatprep.subr.bf16.mxu0 %v3470_v54  ;;  %2368 = vmatprep.subr.bf16.mxu1 %v3473_v55  ;;  %v3521_v53 = vld [vmem:[#allocation5 + $0x744] ss:$16 sps:$4 sm:$0xff]   ;;  %v164_v54 = vrot.slane %v3925_v9, %v163_v49  ;;  %v3516_v55 = vld [vmem:[#allocation5 + $0x540] ss:$16 sps:$4 sm:$0xff]   ;;  %v3584_v49 = vld [vmem:[#allocation5 + $0x1ec] ss:$16 sps:$4 sm:$0xff]  }
 0x12c   :  { %2328 = vmatpush1.bf16.msra.mxu0 %v3468_v56  ;;  %2369 = vmatpush1.bf16.msra.mxu1 %v3471_v58  ;;  %v156_v56 = vrot.slane %v3925_v9, %v155_v51  ;;  %v3524_v58 = vld [vmem:[#allocation5 + $0x524] ss:$16 sps:$4 sm:$0xff]   ;;  %v3528_v9 = vld [vmem:[#allocation5 + $0x500] ss:$16 sps:$4 sm:$0xff]   ;;  %v3582_v51 = vld [vmem:[#allocation5 + $0x1e8] ss:$16 sps:$4 sm:$0xff]  }
 0x12d   :  { %2329 = vmatprep.subr.bf16.mxu0 %v3476_v59  ;;  %v3957_v3 = vpop.f32.mrf.mxu0  ;;  %2370 = vmatprep.subr.bf16.mxu1 %v3479_v61  ;;  %v3960_v6 = vpop.f32.mrf.mxu1  ;;  %v3527_v59 = vld [vmem:[#allocation5 + $0x724] ss:$16 sps:$4 sm:$0xff]   ;;  %v3522_v61 = vld [vmem:[#allocation5 + $0x520] ss:$16 sps:$4 sm:$0xff]  }
 0x12e   :  { %v655_v60 = vadd.f32 %v3960_v6, %v164_v54  ;;  %v3539_v6 = vld [vmem:[#allocation5 + $0x2ec] ss:$16 sps:$4 sm:$0xff]  }
 0x12f   :  { %v615_v14 = vpop.f32.mrf.mxu0  ;;  %v656_v17 = vpop.f32.mrf.mxu1  ;;  %v3593_v54 = vld [vmem:[#allocation5 + $0x3cc] ss:$16 sps:$4 sm:$0xff]  }
 0x130   :  { %2330 = vmatpush1.bf16.msra.mxu0 %v3474_v62  ;;  %v616_v16 = vadd.f32 %v615_v14, %v160_v63  ;;  %2371 = vmatpush1.bf16.msra.mxu1 %v3477_v1  ;;  %v657_v21 = vadd.f32 %v656_v17, %v168_v4  ;;  %v614_v62 = vadd.f32 %v3957_v3, %v156_v56  ;;  %v3525_v63 = vld [vmem:[#allocation5 + $0x720] ss:$16 sps:$4 sm:$0xff]   ;;  %v3530_v1 = vld [vmem:[#allocation5 + $0x504] ss:$16 sps:$4 sm:$0xff]   ;;  %v667_v4 = vmax.f32 %v655_v60, 0.0 }
 0x131   :  { %2331 = vmatprep.subr.bf16.mxu0 %v3482_v2  ;;  %v617_v20 = vpop.f32.mrf.mxu0  ;;  %2372 = vmatprep.subr.bf16.mxu1 %v3485_v5  ;;  %v658_v23 = vpop.f32.mrf.mxu1  ;;  %v3533_v2 = vld [vmem:[#allocation5 + $0x704] ss:$16 sps:$4 sm:$0xff]   ;;  %v3531_v14 = vld [vmem:[#allocation5 + $0x700] ss:$16 sps:$4 sm:$0xff]   ;;  %v3534_v3 = vld [vmem:[#allocation5 + $0xe8] ss:$16 sps:$4 sm:$0xff]  }
 0x132   :  { %v666_v12 = vmax.f32 %v616_v16, 0.0  ;;  %v668_v24 = vmax.f32 %v657_v21, 0.0  ;;  %v665_v5 = vmax.f32 %v614_v62, 0.0  ;;  %v3974_v16 = vpack.c.bf16 %v667_v4, %v667_v4  ;;  %v3545_v20 = vld [vmem:[#allocation5 + $0x2cc] ss:$16 sps:$4 sm:$0xff]  }
 0x133   :  { %v618_v25 = vpop.f32.mrf.mxu0  ;;  %v659_v28 = vpop.f32.mrf.mxu1  ;;  %v3540_v21 = vld [vmem:[#allocation5 + $0xc8] ss:$16 sps:$4 sm:$0xff]   ;;  %v3551_v23 = vld [vmem:[#allocation5 + $0x2ac] ss:$16 sps:$4 sm:$0xff]  }
 0x134   :  { %2332 = vmatpush1.bf16.msra.mxu0 %v3480_v15  ;;  %v3962_v27 = vpack.c.bf16 %v666_v12, %v666_v12  ;;  %2373 = vmatpush1.bf16.msra.mxu1 %v3483_v18  ;;  %v3964_v31 = vpack.c.bf16 %v668_v24, %v668_v24  ;;  %v3536_v15 = vld [vmem:[#allocation5 + $0xec] ss:$16 sps:$4 sm:$0xff]   ;;  %v3976_v17 = vpack.c.bf16 %v665_v5, %v665_v5  ;;  %v3537_v18 = vld [vmem:[#allocation5 + $0x2e8] ss:$16 sps:$4 sm:$0xff]  }
 0x135   :  { %2333 = vmatprep.subr.bf16.mxu0 %v3488_v19  ;;  %2374 = vmatprep.subr.bf16.mxu1 %v3491_v22  ;;  %v3542_v19 = vld [vmem:[#allocation5 + $0xcc] ss:$16 sps:$4 sm:$0xff]   ;;  %v3543_v22 = vld [vmem:[#allocation5 + $0x2c8] ss:$16 sps:$4 sm:$0xff]  }
 0x136   :  { %2349 = vmatprep.mubr.bf16.mxu0 %v3962_v27  ;;  %2390 = vmatprep.mubr.bf16.mxu1 %v3964_v31  ;;  %v3548_v12 = vld [vmem:[#allocation5 + $0xac] ss:$16 sps:$4 sm:$0xff]   ;;  %v3546_v24 = vld [vmem:[#allocation5 + $0xa8] ss:$16 sps:$4 sm:$0xff]  }
 0x137   :  { %v3549_v25 = vld [vmem:[#allocation5 + $0x2a8] ss:$16 sps:$4 sm:$0xff]   ;;  %v3557_v28 = vld [vmem:[#allocation5 + $0x28c] ss:$16 sps:$4 sm:$0xff]  }
 0x138   :  { %2334 = vmatpush2.bf16.msra.mxu0 %v3486_v26  ;;  %2375 = vmatpush2.bf16.msra.mxu1 %v3489_v29  ;;  %v3554_v26 = vld [vmem:[#allocation5 + $0x8c] ss:$16 sps:$4 sm:$0xff]   ;;  %v3552_v29 = vld [vmem:[#allocation5 + $0x88] ss:$16 sps:$4 sm:$0xff]  }
 0x139   :  { %2335 = vmatprep.subr.bf16.mxu0 %v3494_v30  ;;  %2376 = vmatprep.subr.bf16.mxu1 %v3497_v34  ;;  %v3560_v30 = vld [vmem:[#allocation5 + $0x6c] ss:$16 sps:$4 sm:$0xff]   ;;  %v3591_v56 = vld [vmem:[#allocation5 + $0x3c8] ss:$16 sps:$4 sm:$0xff]  }
 0x13a   :  { %v3563_v34 = vld [vmem:[#allocation5 + $0x26c] ss:$16 sps:$4 sm:$0xff]   ;;  %v3597_v60 = vld [vmem:[#allocation5 + $0x3a8] ss:$16 sps:$4 sm:$0xff]  }
 0x13b   :  { %v3605_v62 = vld [vmem:[#allocation5 + $0x38c] ss:$16 sps:$4 sm:$0xff]   ;;  %v3609_v5 = vld [vmem:[#allocation5 + $0x368] ss:$16 sps:$4 sm:$0xff]  }
 0x13c   :  { %2336 = vmatpush2.bf16.msra.mxu0 %v3492_v35  ;;  %2377 = vmatpush2.bf16.msra.mxu1 %v3495_v38  ;;  %v3561_v35 = vld [vmem:[#allocation5 + $0x268] ss:$16 sps:$4 sm:$0xff]   ;;  %v3566_v38 = vld [vmem:[#allocation5 + $0x4c] ss:$16 sps:$4 sm:$0xff]  }
 0x13d   :  { %2337 = vmatprep.subr.bf16.mxu0 %v3500_v39  ;;  %2378 = vmatprep.subr.bf16.mxu1 %v3503_v40  ;;  %v3569_v39 = vld [vmem:[#allocation5 + $0x24c] ss:$16 sps:$4 sm:$0xff]   ;;  %v3564_v40 = vld [vmem:[#allocation5 + $0x48] ss:$16 sps:$4 sm:$0xff]  }
 0x13e   :  { %v3611_v4 = vld [vmem:[#allocation5 + $0x36c] ss:$16 sps:$4 sm:$0xff]  }
 0x140   :  { %2338 = vmatpush2.bf16.msra.mxu0 %v3498_v41  ;;  %2379 = vmatpush2.bf16.msra.mxu1 %v3501_v0  ;;  %v3567_v41 = vld [vmem:[#allocation5 + $0x248] ss:$16 sps:$4 sm:$0xff]   ;;  %v3572_v0 = vld [vmem:[#allocation5 + $0x2c] ss:$16 sps:$4 sm:$0xff]  }
 0x141   :  { %2339 = vmatprep.subr.bf16.mxu0 %v3506_v42  ;;  %2380 = vmatprep.subr.bf16.mxu1 %v3509_v43  ;;  %v3575_v42 = vld [vmem:[#allocation5 + $0x22c] ss:$16 sps:$4 sm:$0xff]   ;;  %v3570_v43 = vld [vmem:[#allocation5 + $0x28] ss:$16 sps:$4 sm:$0xff]  }
 0x144   :  { %2340 = vmatpush2.bf16.msra.mxu0 %v3504_v44  ;;  %2381 = vmatpush2.bf16.msra.mxu1 %v3507_v45  ;;  %v3573_v44 = vld [vmem:[#allocation5 + $0x228] ss:$16 sps:$4 sm:$0xff]   ;;  %v3578_v45 = vld [vmem:[#allocation5 + $0xc] ss:$16 sps:$4 sm:$0xff]  }
 0x145   :  { %2341 = vmatprep.subr.bf16.mxu0 %v3512_v46  ;;  %2382 = vmatprep.subr.bf16.mxu1 %v3515_v47  ;;  %v3581_v46 = vld [vmem:[#allocation5 + $0x20c] ss:$16 sps:$4 sm:$0xff]   ;;  %v3576_v47 = vld [vmem:[#allocation5 + $0x8] ss:$16 sps:$4 sm:$0xff]  }
 0x148   :  { %2342 = vmatpush2.bf16.msra.mxu0 %v3510_v48  ;;  %2383 = vmatpush2.bf16.msra.mxu1 %v3513_v50  ;;  %v3579_v48 = vld [vmem:[#allocation5 + $0x208] ss:$16 sps:$4 sm:$0xff]   ;;  %v3587_v50 = vld [vmem:[#allocation5 + $0x3ec] ss:$16 sps:$4 sm:$0xff]  }
 0x149   :  { %2343 = vmatprep.subr.bf16.mxu0 %v3518_v52  ;;  %2384 = vmatprep.subr.bf16.mxu1 %v3521_v53  ;;  %v3585_v52 = vld [vmem:[#allocation5 + $0x3e8] ss:$16 sps:$4 sm:$0xff]   ;;  %v3590_v53 = vld [vmem:[#allocation5 + $0x1cc] ss:$16 sps:$4 sm:$0xff]  }
 0x14c   :  { %2344 = vmatpush2.bf16.msra.mxu0 %v3516_v55  ;;  %2385 = vmatpush2.bf16.msra.mxu1 %v3519_v57  ;;  %v3588_v55 = vld [vmem:[#allocation5 + $0x1c8] ss:$16 sps:$4 sm:$0xff]   ;;  %v3596_v57 = vld [vmem:[#allocation5 + $0x1ac] ss:$16 sps:$4 sm:$0xff]  }
 0x14d   :  { %2345 = vmatprep.subr.bf16.mxu0 %v3524_v58  ;;  %2386 = vmatprep.subr.bf16.mxu1 %v3527_v59  ;;  %v3599_v58 = vld [vmem:[#allocation5 + $0x3ac] ss:$16 sps:$4 sm:$0xff]   ;;  %v3594_v59 = vld [vmem:[#allocation5 + $0x1a8] ss:$16 sps:$4 sm:$0xff]  }
 0x150   :  { %2346 = vmatpush2.bf16.msra.mxu0 %v3522_v61  ;;  %2387 = vmatpush2.bf16.msra.mxu1 %v3525_v63  ;;  %v3602_v61 = vld [vmem:[#allocation5 + $0x18c] ss:$16 sps:$4 sm:$0xff]   ;;  %v3600_v63 = vld [vmem:[#allocation5 + $0x188] ss:$16 sps:$4 sm:$0xff]  }
 0x151   :  { %2347 = vmatprep.subr.bf16.mxu0 %v3530_v1  ;;  %2388 = vmatprep.subr.bf16.mxu1 %v3533_v2  ;;  %v3603_v1 = vld [vmem:[#allocation5 + $0x388] ss:$16 sps:$4 sm:$0xff]   ;;  %v3608_v2 = vld [vmem:[#allocation5 + $0x16c] ss:$16 sps:$4 sm:$0xff]  }
 0x154   :  { %2348 = vmatpush2.bf16.msra.mxu0 %v3528_v9  ;;  %2389 = vmatpush2.bf16.msra.mxu1 %v3531_v14  ;;  %v3606_v9 = vld [vmem:[#allocation5 + $0x168] ss:$16 sps:$4 sm:$0xff]   ;;  %v3614_v14 = vld [vmem:[#allocation5 + $0x14c] ss:$16 sps:$4 sm:$0xff]  }
 0x155   :  { %2399 = vmatprep.subr.bf16.mxu0 %v3536_v15  ;;  %2440 = vmatprep.subr.bf16.mxu1 %v3539_v6  ;;  %v3617_v15 = vld [vmem:[#allocation5 + $0x34c] ss:$16 sps:$4 sm:$0xff]   ;;  %v3612_v6 = vld [vmem:[#allocation5 + $0x148] ss:$16 sps:$4 sm:$0xff]  }
 0x157   :  { %2350 = vmatmul.mubr.bf16.vlgmr.msra.gmra.mxu0 %v3976_v17  ;;  %2391 = vmatmul.mubr.bf16.vlgmr.msra.gmra.mxu1 %v3974_v16 }
 0x158   :  { %2400 = vmatpush1.bf16.msra.mxu0 %v3534_v3  ;;  %2431 = vmatprep.mubr.bf16.mxu0 %v3944_v33  ;;  %v3555_v33 = vld [vmem:[#allocation5 + $0x288] ss:$16 sps:$4 sm:$0xff]  }
 0x159   :  { %2441 = vmatpush1.bf16.msra.mxu1 %v3537_v18  ;;  %2472 = vmatprep.mubr.bf16.mxu1 %v3948_v37  ;;  %v3558_v37 = vld [vmem:[#allocation5 + $0x68] ss:$16 sps:$4 sm:$0xff]   ;;  %v3620_v18 = vld [vmem:[#allocation5 + $0x12c] ss:$16 sps:$4 sm:$0xff]  }
 0x15a   :  { %2401 = vmatprep.subr.bf16.mxu0 %v3542_v19  ;;  %2442 = vmatprep.subr.bf16.mxu1 %v3545_v20  ;;  %v3615_v3 = vld [vmem:[#allocation5 + $0x348] ss:$16 sps:$4 sm:$0xff]   ;;  %v3623_v19 = vld [vmem:[#allocation5 + $0x32c] ss:$16 sps:$4 sm:$0xff]  }
 0x15b   :  { %v3618_v20 = vld [vmem:[#allocation5 + $0x128] ss:$16 sps:$4 sm:$0xff]  }
 0x15c   :  { %2402 = vmatpush1.bf16.msra.mxu0 %v3540_v21  ;;  %v3621_v21 = vld [vmem:[#allocation5 + $0x328] ss:$16 sps:$4 sm:$0xff]  }
 0x15d   :  { %2443 = vmatpush1.bf16.msra.mxu1 %v3543_v22  ;;  %2403 = vmatprep.subr.bf16.mxu0 %v3548_v12  ;;  %v3626_v22 = vld [vmem:[#allocation5 + $0x10c] ss:$16 sps:$4 sm:$0xff]  }
 0x15e   :  { %2444 = vmatprep.subr.bf16.mxu1 %v3551_v23  ;;  %v3629_v12 = vld [vmem:[#allocation5 + $0x30c] ss:$16 sps:$4 sm:$0xff]   ;;  %v3624_v23 = vld [vmem:[#allocation5 + $0x108] ss:$16 sps:$4 sm:$0xff]  }
 0x160   :  { %2404 = vmatpush1.bf16.msra.mxu0 %v3546_v24  ;;  %v3627_v24 = vld [vmem:[#allocation5 + $0x308] ss:$16 sps:$4 sm:$0xff]  }
 0x161   :  { %2445 = vmatpush1.bf16.msra.mxu1 %v3549_v25  ;;  %2405 = vmatprep.subr.bf16.mxu0 %v3554_v26  ;;  %v3632_v25 = vld [vmem:[#allocation5 + $0x4ec] ss:$16 sps:$4 sm:$0xff]  }
 0x162   :  { %2446 = vmatprep.subr.bf16.mxu1 %v3557_v28  ;;  %v3635_v26 = vld [vmem:[#allocation5 + $0x6ec] ss:$16 sps:$4 sm:$0xff]   ;;  %v3630_v28 = vld [vmem:[#allocation5 + $0x4e8] ss:$16 sps:$4 sm:$0xff]  }
 0x164   :  { %2406 = vmatpush1.bf16.msra.mxu0 %v3552_v29  ;;  %v3633_v29 = vld [vmem:[#allocation5 + $0x6e8] ss:$16 sps:$4 sm:$0xff]  }
 0x165   :  { %2447 = vmatpush1.bf16.msra.mxu1 %v3555_v33  ;;  %2407 = vmatprep.subr.bf16.mxu0 %v3560_v30  ;;  %v3638_v33 = vld [vmem:[#allocation5 + $0x4cc] ss:$16 sps:$4 sm:$0xff]  }
 0x166   :  { %2448 = vmatprep.subr.bf16.mxu1 %v3563_v34  ;;  %v3641_v30 = vld [vmem:[#allocation5 + $0x6cc] ss:$16 sps:$4 sm:$0xff]   ;;  %v3636_v34 = vld [vmem:[#allocation5 + $0x4c8] ss:$16 sps:$4 sm:$0xff]  }
 0x168   :  { %2408 = vmatpush1.bf16.msra.mxu0 %v3558_v37  ;;  %v3639_v37 = vld [vmem:[#allocation5 + $0x6c8] ss:$16 sps:$4 sm:$0xff]  }
 0x169   :  { %2449 = vmatpush1.bf16.msra.mxu1 %v3561_v35  ;;  %2409 = vmatprep.subr.bf16.mxu0 %v3566_v38  ;;  %v3644_v35 = vld [vmem:[#allocation5 + $0x4ac] ss:$16 sps:$4 sm:$0xff]  }
 0x16a   :  { %2450 = vmatprep.subr.bf16.mxu1 %v3569_v39  ;;  %v3647_v38 = vld [vmem:[#allocation5 + $0x6ac] ss:$16 sps:$4 sm:$0xff]   ;;  %v3642_v39 = vld [vmem:[#allocation5 + $0x4a8] ss:$16 sps:$4 sm:$0xff]  }
 0x16c   :  { %2410 = vmatpush1.bf16.msra.mxu0 %v3564_v40  ;;  %v3650_v40 = vld [vmem:[#allocation5 + $0x48c] ss:$16 sps:$4 sm:$0xff]  }
 0x16d   :  { %2451 = vmatpush1.bf16.msra.mxu1 %v3567_v41  ;;  %2411 = vmatprep.subr.bf16.mxu0 %v3572_v0  ;;  %v3648_v41 = vld [vmem:[#allocation5 + $0x488] ss:$16 sps:$4 sm:$0xff]   ;;  %v3656_v0 = vld [vmem:[#allocation5 + $0x46c] ss:$16 sps:$4 sm:$0xff]  }
 0x16e   :  { %2452 = vmatprep.subr.bf16.mxu1 %v3575_v42  ;;  %v3659_v42 = vld [vmem:[#allocation5 + $0x66c] ss:$16 sps:$4 sm:$0xff]  }
 0x170   :  { %2412 = vmatpush1.bf16.msra.mxu0 %v3570_v43  ;;  %v3657_v43 = vld [vmem:[#allocation5 + $0x668] ss:$16 sps:$4 sm:$0xff]  }
 0x171   :  { %2453 = vmatpush1.bf16.msra.mxu1 %v3573_v44  ;;  %2413 = vmatprep.subr.bf16.mxu0 %v3578_v45  ;;  %v3662_v44 = vld [vmem:[#allocation5 + $0x44c] ss:$16 sps:$4 sm:$0xff]  }
 0x172   :  { %2454 = vmatprep.subr.bf16.mxu1 %v3581_v46  ;;  %v3665_v45 = vld [vmem:[#allocation5 + $0x64c] ss:$16 sps:$4 sm:$0xff]   ;;  %v3660_v46 = vld [vmem:[#allocation5 + $0x448] ss:$16 sps:$4 sm:$0xff]  }
 0x174   :  { %2414 = vmatpush1.bf16.msra.mxu0 %v3576_v47  ;;  %v3663_v47 = vld [vmem:[#allocation5 + $0x648] ss:$16 sps:$4 sm:$0xff]  }
 0x175   :  { %2455 = vmatpush1.bf16.msra.mxu1 %v3579_v48  ;;  %2415 = vmatprep.subr.bf16.mxu0 %v3584_v49  ;;  %v3668_v48 = vld [vmem:[#allocation5 + $0x42c] ss:$16 sps:$4 sm:$0xff]  }
 0x176   :  { %2456 = vmatprep.subr.bf16.mxu1 %v3587_v50  ;;  %v3671_v49 = vld [vmem:[#allocation5 + $0x62c] ss:$16 sps:$4 sm:$0xff]   ;;  %v3666_v50 = vld [vmem:[#allocation5 + $0x428] ss:$16 sps:$4 sm:$0xff]  }
 0x178   :  { %2416 = vmatpush2.bf16.msra.mxu0 %v3582_v51  ;;  %v3669_v51 = vld [vmem:[#allocation5 + $0x628] ss:$16 sps:$4 sm:$0xff]  }
 0x179   :  { %2457 = vmatpush2.bf16.msra.mxu1 %v3585_v52  ;;  %2417 = vmatprep.subr.bf16.mxu0 %v3590_v53  ;;  %v3674_v52 = vld [vmem:[#allocation5 + $0x40c] ss:$16 sps:$4 sm:$0xff]  }
 0x17a   :  { %2458 = vmatprep.subr.bf16.mxu1 %v3593_v54  ;;  %v3677_v53 = vld [vmem:[#allocation5 + $0x60c] ss:$16 sps:$4 sm:$0xff]   ;;  %v3672_v54 = vld [vmem:[#allocation5 + $0x408] ss:$16 sps:$4 sm:$0xff]  }
 0x17c   :  { %2418 = vmatpush2.bf16.msra.mxu0 %v3588_v55  ;;  %v3675_v55 = vld [vmem:[#allocation5 + $0x608] ss:$16 sps:$4 sm:$0xff]  }
 0x17d   :  { %2459 = vmatpush2.bf16.msra.mxu1 %v3591_v56  ;;  %2419 = vmatprep.subr.bf16.mxu0 %v3596_v57  ;;  %v3680_v56 = vld [vmem:[#allocation5 + $0x5ec] ss:$16 sps:$4 sm:$0xff]  }
 0x17e   :  { %2460 = vmatprep.subr.bf16.mxu1 %v3599_v58  ;;  %v3683_v57 = vld [vmem:[#allocation5 + $0x7ec] ss:$16 sps:$4 sm:$0xff]   ;;  %v3678_v58 = vld [vmem:[#allocation5 + $0x5e8] ss:$16 sps:$4 sm:$0xff]  }
 0x180   :  { %2420 = vmatpush2.bf16.msra.mxu0 %v3594_v59  ;;  %v3681_v59 = vld [vmem:[#allocation5 + $0x7e8] ss:$16 sps:$4 sm:$0xff]  }
 0x181   :  { %2461 = vmatpush2.bf16.msra.mxu1 %v3597_v60  ;;  %2421 = vmatprep.subr.bf16.mxu0 %v3602_v61  ;;  %v3686_v60 = vld [vmem:[#allocation5 + $0x5cc] ss:$16 sps:$4 sm:$0xff]  }
 0x182   :  { %2462 = vmatprep.subr.bf16.mxu1 %v3605_v62  ;;  %v3689_v61 = vld [vmem:[#allocation5 + $0x7cc] ss:$16 sps:$4 sm:$0xff]   ;;  %v3684_v62 = vld [vmem:[#allocation5 + $0x5c8] ss:$16 sps:$4 sm:$0xff]  }
 0x184   :  { %2422 = vmatpush2.bf16.msra.mxu0 %v3600_v63  ;;  %v3687_v63 = vld [vmem:[#allocation5 + $0x7c8] ss:$16 sps:$4 sm:$0xff]  }
 0x185   :  { %2463 = vmatpush2.bf16.msra.mxu1 %v3603_v1  ;;  %2423 = vmatprep.subr.bf16.mxu0 %v3608_v2  ;;  %v3692_v1 = vld [vmem:[#allocation5 + $0x5ac] ss:$16 sps:$4 sm:$0xff]  }
 0x186   :  { %2464 = vmatprep.subr.bf16.mxu1 %v3611_v4  ;;  %v3695_v2 = vld [vmem:[#allocation5 + $0x7ac] ss:$16 sps:$4 sm:$0xff]   ;;  %v3690_v4 = vld [vmem:[#allocation5 + $0x5a8] ss:$16 sps:$4 sm:$0xff]  }
 0x188   :  { %2424 = vmatpush2.bf16.msra.mxu0 %v3606_v9  ;;  %v3693_v9 = vld [vmem:[#allocation5 + $0x7a8] ss:$16 sps:$4 sm:$0xff]  }
 0x189   :  { %2465 = vmatpush2.bf16.msra.mxu1 %v3609_v5  ;;  %2425 = vmatprep.subr.bf16.mxu0 %v3614_v14  ;;  %v3698_v5 = vld [vmem:[#allocation5 + $0x58c] ss:$16 sps:$4 sm:$0xff]  }
 0x18a   :  { %2466 = vmatprep.subr.bf16.mxu1 %v3617_v15  ;;  %v3701_v14 = vld [vmem:[#allocation5 + $0x78c] ss:$16 sps:$4 sm:$0xff]   ;;  %v3696_v15 = vld [vmem:[#allocation5 + $0x588] ss:$16 sps:$4 sm:$0xff]  }
 0x18c   :  { %2426 = vmatpush2.bf16.msra.mxu0 %v3612_v6  ;;  %v3699_v6 = vld [vmem:[#allocation5 + $0x788] ss:$16 sps:$4 sm:$0xff]  }
 0x18d   :  { %2467 = vmatpush2.bf16.msra.mxu1 %v3615_v3  ;;  %2427 = vmatprep.subr.bf16.mxu0 %v3620_v18  ;;  %v3704_v3 = vld [vmem:[#allocation5 + $0x56c] ss:$16 sps:$4 sm:$0xff]  }
 0x18e   :  { %2468 = vmatprep.subr.bf16.mxu1 %v3623_v19  ;;  %v3707_v18 = vld [vmem:[#allocation5 + $0x76c] ss:$16 sps:$4 sm:$0xff]   ;;  %v3702_v19 = vld [vmem:[#allocation5 + $0x568] ss:$16 sps:$4 sm:$0xff]  }
 0x190   :  { %2428 = vmatpush2.bf16.msra.mxu0 %v3618_v20  ;;  %v3705_v20 = vld [vmem:[#allocation5 + $0x768] ss:$16 sps:$4 sm:$0xff]  }
 0x191   :  { %2469 = vmatpush2.bf16.msra.mxu1 %v3621_v21  ;;  %2429 = vmatprep.subr.bf16.mxu0 %v3626_v22  ;;  %v3710_v21 = vld [vmem:[#allocation5 + $0x54c] ss:$16 sps:$4 sm:$0xff]  }
 0x192   :  { %2470 = vmatprep.subr.bf16.mxu1 %v3629_v12  ;;  %v3713_v22 = vld [vmem:[#allocation5 + $0x74c] ss:$16 sps:$4 sm:$0xff]   ;;  %v3708_v12 = vld [vmem:[#allocation5 + $0x548] ss:$16 sps:$4 sm:$0xff]  }
 0x194   :  { %2430 = vmatpush2.bf16.msra.mxu0 %v3624_v23  ;;  %v3711_v23 = vld [vmem:[#allocation5 + $0x748] ss:$16 sps:$4 sm:$0xff]  }
 0x195   :  { %2471 = vmatpush2.bf16.msra.mxu1 %v3627_v24  ;;  %2481 = vmatprep.subr.bf16.mxu0 %v3632_v25  ;;  %v3716_v24 = vld [vmem:[#allocation5 + $0x52c] ss:$16 sps:$4 sm:$0xff]  }
 0x196   :  { %2522 = vmatprep.subr.bf16.mxu1 %v3635_v26  ;;  %v3719_v25 = vld [vmem:[#allocation5 + $0x72c] ss:$16 sps:$4 sm:$0xff]   ;;  %v3714_v26 = vld [vmem:[#allocation5 + $0x528] ss:$16 sps:$4 sm:$0xff]  }
 0x197   :  { %2432 = vmatmul.mubr.bf16.vlgmr.msra.gmra.mxu0 %v3946_v36  ;;  %v3645_v36 = vld [vmem:[#allocation5 + $0x6a8] ss:$16 sps:$4 sm:$0xff]  }
 0x198   :  { %2473 = vmatmul.mubr.bf16.vlgmr.msra.gmra.mxu1 %v3942_v32  ;;  %2482 = vmatpush1.bf16.msra.mxu0 %v3630_v28  ;;  %v3653_v32 = vld [vmem:[#allocation5 + $0x68c] ss:$16 sps:$4 sm:$0xff]   ;;  %v3717_v28 = vld [vmem:[#allocation5 + $0x728] ss:$16 sps:$4 sm:$0xff]  }
 0x199   :  { %2513 = vmatprep.mubr.bf16.mxu0 %v3962_v27  ;;  %2523 = vmatpush1.bf16.msra.mxu1 %v3633_v29  ;;  %v3651_v27 = vld [vmem:[#allocation5 + $0x688] ss:$16 sps:$4 sm:$0xff]   ;;  %v3722_v29 = vld [vmem:[#allocation5 + $0x50c] ss:$16 sps:$4 sm:$0xff]  }
 0x19a   :  { %2554 = vmatprep.mubr.bf16.mxu1 %v3964_v31  ;;  %2483 = vmatprep.subr.bf16.mxu0 %v3638_v33  ;;  %v3654_v31 = vld [vmem:[#allocation5 + $0x468] ss:$16 sps:$4 sm:$0xff]   ;;  %v3725_v33 = vld [vmem:[#allocation5 + $0x70c] ss:$16 sps:$4 sm:$0xff]  }
 0x19b   :  { %2524 = vmatprep.subr.bf16.mxu1 %v3641_v30  ;;  %v3720_v30 = vld [vmem:[#allocation5 + $0x508] ss:$16 sps:$4 sm:$0xff]  }
 0x19c   :  { %2484 = vmatpush1.bf16.msra.mxu0 %v3636_v34  ;;  %v3723_v34 = vld [vmem:[#allocation5 + $0x708] ss:$16 sps:$4 sm:$0xff]  }
 0x19d   :  { %2525 = vmatpush1.bf16.msra.mxu1 %v3639_v37  ;;  %2485 = vmatprep.subr.bf16.mxu0 %v3644_v35  ;;  %v3726_v37 = vld [vmem:[#allocation7 + $0x78] sm:$0xff]  }
 0x19e   :  { %2526 = vmatprep.subr.bf16.mxu1 %v3647_v38  ;;  %v3727_v35 = vld [vmem:[#allocation7 + $0x38] sm:$0xff]   ;;  %v3728_v38 = vld [vmem:[#allocation7 + $0x70] sm:$0xff]  }
 0x1a0   :  { %2486 = vmatpush1.bf16.msra.mxu0 %v3642_v39 }
 0x1a1   :  { %2527 = vmatpush1.bf16.msra.mxu1 %v3645_v36  ;;  %2487 = vmatprep.subr.bf16.mxu0 %v3650_v40  ;;  %v3729_v40 = vld [vmem:[#allocation7 + $0x30] sm:$0xff]  }
 0x1a2   :  { %2528 = vmatprep.subr.bf16.mxu1 %v3653_v32 }
 0x1a4   :  { %2488 = vmatpush1.bf16.msra.mxu0 %v3648_v41  ;;  %v3730_v41 = vld [vmem:[#allocation7 + $0x68] sm:$0xff]  }
 0x1a5   :  { %2529 = vmatpush1.bf16.msra.mxu1 %v3651_v27  ;;  %2489 = vmatprep.subr.bf16.mxu0 %v3656_v0 }
 0x1a6   :  { %2530 = vmatprep.subr.bf16.mxu1 %v3659_v42 }
 0x1a8   :  { %2490 = vmatpush1.bf16.msra.mxu0 %v3654_v31  ;;  %v3731_v31 = vld [vmem:[#allocation7 + $0x28] sm:$0xff]  }
 0x1a9   :  { %2531 = vmatpush1.bf16.msra.mxu1 %v3657_v43  ;;  %2491 = vmatprep.subr.bf16.mxu0 %v3662_v44  ;;  %v3732_v44 = vld [vmem:[#allocation7 + $0x60] sm:$0xff]  }
 0x1aa   :  { %2532 = vmatprep.subr.bf16.mxu1 %v3665_v45 }
 0x1ac   :  { %2492 = vmatpush1.bf16.msra.mxu0 %v3660_v46  ;;  %v3742_v46 = vld [vmem:[#allocation7 + $0xf8] sm:$0xff]  }
 0x1ad   :  { %2533 = vmatpush1.bf16.msra.mxu1 %v3663_v47  ;;  %2493 = vmatprep.subr.bf16.mxu0 %v3668_v48  ;;  %v3744_v47 = vld [vmem:[#allocation7 + $0xf0] sm:$0xff]   ;;  %v3734_v48 = vld [vmem:[#allocation7 + $0x58] sm:$0xff]  }
 0x1ae   :  { %2534 = vmatprep.subr.bf16.mxu1 %v3671_v49  ;;  %v3745_v49 = vld [vmem:[#allocation7 + $0xb0] sm:$0xff]  }
 0x1b0   :  { %2494 = vmatpush1.bf16.msra.mxu0 %v3666_v50  ;;  %v3746_v50 = vld [vmem:[#allocation7 + $0xe8] sm:$0xff]  }
 0x1b1   :  { %2535 = vmatpush1.bf16.msra.mxu1 %v3669_v51  ;;  %2495 = vmatprep.subr.bf16.mxu0 %v3674_v52  ;;  %v3735_v51 = vld [vmem:[#allocation7 + $0x18] sm:$0xff]   ;;  %v3736_v52 = vld [vmem:[#allocation7 + $0x50] sm:$0xff]  }
 0x1b2   :  { %2536 = vmatprep.subr.bf16.mxu1 %v3677_v53  ;;  %v3747_v53 = vld [vmem:[#allocation7 + $0xa8] sm:$0xff]  }
 0x1b4   :  { %2496 = vmatpush1.bf16.msra.mxu0 %v3672_v54  ;;  %v3748_v54 = vld [vmem:[#allocation7 + $0xe0] sm:$0xff]  }
 0x1b5   :  { %2537 = vmatpush1.bf16.msra.mxu1 %v3675_v55  ;;  %2497 = vmatprep.subr.bf16.mxu0 %v3680_v56  ;;  %v3737_v55 = vld [vmem:[#allocation7 + $0x10] sm:$0xff]   ;;  %v3738_v56 = vld [vmem:[#allocation7 + $0x48] sm:$0xff]  }
 0x1b6   :  { %2538 = vmatprep.subr.bf16.mxu1 %v3683_v57  ;;  %v3749_v57 = vld [vmem:[#allocation7 + $0xa0] sm:$0xff]  }
 0x1b8   :  { %2498 = vmatpush2.bf16.msra.mxu0 %v3678_v58  ;;  %v3750_v58 = vld [vmem:[#allocation7 + $0xd8] sm:$0xff]  }
 0x1b9   :  { %2539 = vmatpush2.bf16.msra.mxu1 %v3681_v59  ;;  %2499 = vmatprep.subr.bf16.mxu0 %v3686_v60  ;;  %v3739_v59 = vld [vmem:[#allocation7 + $0x8] sm:$0xff]   ;;  %v3740_v60 = vld [vmem:[#allocation7 + $0x40] sm:$0xff]  }
 0x1ba   :  { %2540 = vmatprep.subr.bf16.mxu1 %v3689_v61  ;;  %v3751_v61 = vld [vmem:[#allocation7 + $0x98] sm:$0xff]  }
 0x1bc   :  { %2500 = vmatpush2.bf16.msra.mxu0 %v3684_v62  ;;  %v3741_v62 = vld [vmem:[#allocation7] sm:$0xff]  }
 0x1bd   :  { %2541 = vmatpush2.bf16.msra.mxu1 %v3687_v63  ;;  %2501 = vmatprep.subr.bf16.mxu0 %v3692_v1  ;;  %v933_v63 = vld [vmem:[%s4011_s4] sm:$0xf] }
 0x1be   :  { %2542 = vmatprep.subr.bf16.mxu1 %v3695_v2  ;;  %v938_v1 = vrot.slane %v933_v63, %v139_v8  ;;  %v942_v2 = vrot.slane %v933_v63, %v143_v11  ;;  %v3754_v8 = vld [vmem:[#allocation7 + $0xc8] sm:$0xff]  }
 0x1bf   :  { %v3755_v11 = vld [vmem:[#allocation7 + $0x88] sm:$0xff]  }
 0x1c0   :  { %2502 = vmatpush2.bf16.msra.mxu0 %v3690_v4 }
 0x1c1   :  { %2543 = vmatpush2.bf16.msra.mxu1 %v3693_v9  ;;  %2503 = vmatprep.subr.bf16.mxu0 %v3698_v5 }
 0x1c2   :  { %2544 = vmatprep.subr.bf16.mxu1 %v3701_v14 }
 0x1c4   :  { %2504 = vmatpush2.bf16.msra.mxu0 %v3696_v15  ;;  %v3752_v15 = vld [vmem:[#allocation7 + $0xd0] sm:$0xff]  }
 0x1c5   :  { %2545 = vmatpush2.bf16.msra.mxu1 %v3699_v6  ;;  %2505 = vmatprep.subr.bf16.mxu0 %v3704_v3 }
 0x1c6   :  { %2546 = vmatprep.subr.bf16.mxu1 %v3707_v18 }
 0x1c8   :  { %2506 = vmatpush2.bf16.msra.mxu0 %v3702_v19  ;;  %v3753_v19 = vld [vmem:[#allocation7 + $0x90] sm:$0xff]  }
 0x1c9   :  { %2547 = vmatpush2.bf16.msra.mxu1 %v3705_v20  ;;  %2507 = vmatprep.subr.bf16.mxu0 %v3710_v21 }
 0x1ca   :  { %2548 = vmatprep.subr.bf16.mxu1 %v3713_v22 }
 0x1cc   :  { %2508 = vmatpush2.bf16.msra.mxu0 %v3708_v12 }
 0x1cd   :  { %2549 = vmatpush2.bf16.msra.mxu1 %v3711_v23  ;;  %2509 = vmatprep.subr.bf16.mxu0 %v3716_v24 }
 0x1ce   :  { %2550 = vmatprep.subr.bf16.mxu1 %v3719_v25 }
 0x1d0   :  { %2510 = vmatpush2.bf16.msra.mxu0 %v3714_v26 }
 0x1d1   :  { %2551 = vmatpush2.bf16.msra.mxu1 %v3717_v28  ;;  %2511 = vmatprep.subr.bf16.mxu0 %v3722_v29 }
 0x1d2   :  { %2552 = vmatprep.subr.bf16.mxu1 %v3725_v33 }
 0x1d4   :  { %2512 = vmatpush2.bf16.msra.mxu0 %v3720_v30  ;;  %v3756_v30 = vld [vmem:[#allocation7 + $0xc0] sm:$0xff]  }
 0x1d5   :  { %2553 = vmatpush2.bf16.msra.mxu1 %v3723_v34  ;;  %3286 = vmatprep.subr.bf16.mxu0 %v3726_v37  ;;  %v3757_v37 = vld [vmem:[#allocation7 + $0x80] sm:$0xff]  }
 0x1d6   :  { %3308 = vmatprep.subr.bf16.mxu1 %v3742_v46 }
 0x1d7   :  { %2514 = vmatmul.mubr.bf16.vlgmr.msra.gmra.mxu0 %v3976_v17  ;;  %v2269_v39 = vpop.f32.mrf.mxu0  ;;  %v2310_v36 = vpop.f32.mrf.mxu1  ;;  %v3743_v17 = vld [vmem:[#allocation7 + $0xb8] sm:$0xff]  }
 0x1d8   :  { %2555 = vmatmul.mubr.bf16.vlgmr.msra.gmra.mxu1 %v3974_v16  ;;  %3287 = vmatpush3.bf16.msra.mxu0 %v3727_v35  ;;  %v3733_v16 = vld [vmem:[#allocation7 + $0x20] sm:$0xff]   ;;  %v2270_v4 = vadd.f32 %v2269_v39, %v938_v1 }
 0x1d9   :  { %v2271_v32 = vpop.f32.mrf.mxu0  ;;  %3288 = vmatprep.subr.bf16.mxu0 %v3728_v38  ;;  %v2312_v27 = vpop.f32.mrf.mxu1  ;;  %3309 = vmatpush3.bf16.msra.mxu1 %v3743_v17 }
 0x1da   :  { %3310 = vmatprep.subr.bf16.mxu1 %v3744_v47  ;;  %v2272_v9 = vadd.f32 %v2271_v32, %v942_v2  ;;  %v2311_v5 = vadd.f32 %v2310_v36, %v2270_v4 }
 0x1db   :  { %v2273_v0 = vpop.f32.mrf.mxu0  ;;  %v2314_v42 = vpop.f32.mrf.mxu1 }
 0x1dc   :  { %3289 = vmatpush3.bf16.msra.mxu0 %v3729_v40  ;;  %v2313_v6 = vadd.f32 %v2312_v27, %v2272_v9  ;;  %v946_v42 = vrot.slane %v933_v63, %v147_v10 }
 0x1dd   :  { %v2274_v43 = vpop.f32.mrf.mxu0  ;;  %3290 = vmatprep.subr.bf16.mxu0 %v3730_v41  ;;  %v2315_v45 = vpop.f32.mrf.mxu1  ;;  %3311 = vmatpush3.bf16.msra.mxu1 %v3745_v49 }
 0x1de   :  { %3312 = vmatprep.subr.bf16.mxu1 %v3746_v50 }
 0x1e0   :  { %3291 = vmatpush3.bf16.msra.mxu0 %v3731_v31  ;;  %v950_v31 = vrot.slane %v933_v63, %v151_v13  ;;  %v3253_v63 = vld [vmem:[%s4013_s6] ss:$0 sm:$0xff] }
 0x1e1   :  { %3292 = vmatprep.subr.bf16.mxu0 %v3732_v44  ;;  %3313 = vmatpush3.bf16.msra.mxu1 %v3747_v53 }
 0x1e2   :  { %3314 = vmatprep.subr.bf16.mxu1 %v3748_v54 }
 0x1e4   :  { %3293 = vmatpush3.bf16.msra.mxu0 %v3733_v16 }
 0x1e5   :  { %3294 = vmatprep.subr.bf16.mxu0 %v3734_v48  ;;  %3315 = vmatpush3.bf16.msra.mxu1 %v3749_v57 }
 0x1e6   :  { %3316 = vmatprep.subr.bf16.mxu1 %v3750_v58 }
 0x1e8   :  { %3295 = vmatpush3.bf16.msra.mxu0 %v3735_v51 }
 0x1e9   :  { %3296 = vmatprep.subr.bf16.mxu0 %v3736_v52  ;;  %3317 = vmatpush3.bf16.msra.mxu1 %v3751_v61 }
 0x1ea   :  { %3318 = vmatprep.subr.bf16.mxu1 %v3752_v15 }
 0x1ec   :  { %3297 = vmatpush3.bf16.msra.mxu0 %v3737_v55 }
 0x1ed   :  { %3298 = vmatprep.subr.bf16.mxu0 %v3738_v56  ;;  %3319 = vmatpush3.bf16.msra.mxu1 %v3753_v19 }
 0x1ee   :  { %3320 = vmatprep.subr.bf16.mxu1 %v3754_v8 }
 0x1f0   :  { %3299 = vmatpush3.bf16.msra.mxu0 %v3739_v59 }
 0x1f1   :  { %3300 = vmatprep.subr.bf16.mxu0 %v3740_v60  ;;  %3321 = vmatpush3.bf16.msra.mxu1 %v3755_v11 }
 0x1f2   :  { %3322 = vmatprep.subr.bf16.mxu1 %v3756_v30 }
 0x1f4   :  { %3301 = vmatpush3.bf16.msra.mxu0 %v3741_v62 }
 0x1f5   :  { %3323 = vmatpush3.bf16.msra.mxu1 %v3757_v37 }
 0x217   :  { %v2351_v14 = vpop.f32.mrf.mxu0  ;;  %v2392_v18 = vpop.f32.mrf.mxu1 }
 0x218   :  { %v2352_v3 = vadd.f32 %v2351_v14, %v2311_v5 }
 0x219   :  { %v2353_v20 = vpop.f32.mrf.mxu0  ;;  %v2394_v12 = vpop.f32.mrf.mxu1 }
 0x21a   :  { %v2393_v21 = vadd.f32 %v2392_v18, %v2352_v3  ;;  %v2354_v22 = vadd.f32 %v2353_v20, %v2313_v6 }
 0x21b   :  { %v2355_v23 = vpop.f32.mrf.mxu0  ;;  %v2396_v25 = vpop.f32.mrf.mxu1 }
 0x21c   :  { %v2395_v24 = vadd.f32 %v2394_v12, %v2354_v22  ;;  %v2563_v26 = vmax.f32 %v2393_v21, 0.0 }
 0x21d   :  { %v2356_v28 = vpop.f32.mrf.mxu0  ;;  %v2397_v33 = vpop.f32.mrf.mxu1 }
 0x21e   :  { %v2564_v29 = vmax.f32 %v2395_v24, 0.0  ;;  %v2567_v35 = vpack.c.bf16 %v2563_v26, %v2563_v26 }
 0x220   :  { %v2568_v34 = vpack.c.bf16 %v2564_v29, %v2564_v29 }
 0x222   :  { %2866 = vmatprep.mubr.bf16.mxu0 %v2568_v34 }
 0x223   :  { %2867 = vmatmul.mubr.bf16.vlgmr.msra.gmra.mxu0 %v2567_v35 }
 0x257   :  { %v2433_v38 = vpop.f32.mrf.mxu0 }
 0x258   :  { %v2474_v39 = vpop.f32.mrf.mxu1  ;;  %v2434_v43 = vadd.f32 %v2433_v38, %v946_v42 }
 0x259   :  { %v2435_v36 = vpop.f32.mrf.mxu0 }
 0x25a   :  { %v2476_v40 = vpop.f32.mrf.mxu1  ;;  %v2436_v44 = vadd.f32 %v2435_v36, %v950_v31  ;;  %v2475_v45 = vadd.f32 %v2474_v39, %v2434_v43 }
 0x25b   :  { %v2437_v32 = vpop.f32.mrf.mxu0 }
 0x25c   :  { %v2478_v41 = vpop.f32.mrf.mxu1  ;;  %v2477_v17 = vadd.f32 %v2476_v40, %v2436_v44 }
 0x25d   :  { %v2438_v27 = vpop.f32.mrf.mxu0 }
 0x25e   :  { %v2479_v0 = vpop.f32.mrf.mxu1 }
 0x297   :  { %v2515_v46 = vpop.f32.mrf.mxu0 }
 0x298   :  { %v2516_v47 = vadd.f32 %v2515_v46, %v2475_v45  ;;  %v2556_v16 = vpop.f32.mrf.mxu1 }
 0x299   :  { %v2517_v48 = vpop.f32.mrf.mxu0 }
 0x29a   :  { %v2557_v49 = vadd.f32 %v2556_v16, %v2516_v47  ;;  %v2518_v50 = vadd.f32 %v2517_v48, %v2477_v17  ;;  %v2558_v51 = vpop.f32.mrf.mxu1 }
 0x29b   :  { %v2519_v52 = vpop.f32.mrf.mxu0 }
 0x29c   :  { %v2559_v53 = vadd.f32 %v2558_v51, %v2518_v50  ;;  %v2560_v54 = vpop.f32.mrf.mxu1  ;;  %v2565_v55 = vmax.f32 %v2557_v49, 0.0 }
 0x29d   :  { %v2520_v56 = vpop.f32.mrf.mxu0 }
 0x29e   :  { %v2566_v10 = vmax.f32 %v2559_v53, 0.0  ;;  %v2561_v57 = vpop.f32.mrf.mxu1  ;;  %v2569_v13 = vpack.c.bf16 %v2565_v55, %v2565_v55 }
 0x2a0   :  { %v2570_v7 = vpack.c.bf16 %v2566_v10, %v2566_v10 }
 0x2a2   :  { %2906 = vmatprep.mubr.bf16.mxu1 %v2570_v7 }
 0x2a3   :  { %2907 = vmatmul.mubr.bf16.vlgmr.msra.gmra.mxu1 %v2569_v13 }
 0x2e3   :  { %v3302_v58 = vpop.f32.mrf.mxu0 }
 0x2e5   :  { %v3303_v59 = vpop.f32.mrf.mxu0 }
 0x2e6   :  { %v3304_v60 = vadd.f32 %v3303_v59, %v3302_v58 }
 0x2e7   :  { %v3305_v61 = vpop.f32.mrf.mxu0 }
 0x2e8   :  { %v2869_v4 = vadd.f32 %v3304_v60, %v3253_v63 }
 0x2e9   :  { %v3306_v62 = vpop.f32.mrf.mxu0 }
 0x363   :  { %v3324_v1 = vpop.f32.mrf.mxu1 }
 0x365   :  { %v3325_v2 = vpop.f32.mrf.mxu1 }
 0x366   :  { %v3326_v9 = vadd.f32 %v3325_v2, %v3324_v1 }
 0x367   :  { %v3327_v5 = vpop.f32.mrf.mxu1 }
 0x368   :  { %v2909_v14 = vadd.f32 %v3326_v9, %v2869_v4 }
 0x369   :  { %v3328_v15 = vpop.f32.mrf.mxu1 }
 0x36a   :  { %2914 = vst [vmem:[#allocation8] sm:$0xff] %v2909_v14 }
 0x36b   :  { %2919 = vsyncadd [#allocation4], 96  ;;  %s3854_s24 = smov [#allocation8]  }
 0x36c   :  { %s2920_s25 = sshll.u32 %s3854_s24, 4  ;;  %s2921_s25 = int_to_ptr.vmem [resolvable:$true] %s2920_s25 }
 0x36d   :  { %s3818_s26 = scalar_lea.vmem %s2921_s25, 32  ;;  %s3822_s27 = scalar_lea.vmem %s2921_s25, 128 }
 0x36e   :  { %p3819_p1 = scmp.ne.s32.totalorder %s2921_s25, %s3818_s26  ;;  %p3823_p2 = scmp.lt.s32.totalorder %s2921_s25, %s2921_s25 }
 0x36f   :  { %p3824_p3 = scmp.lt.s32.totalorder %s3822_s27, %s3818_s26 }
 0x371   :  { %p3825_p4 = por %p3824_p3, %p3823_p2 }
 0x373   :  { %p3826_p5 = pnand %p3825_p4, %p3819_p1 }
 0x375   :  { %3829 = shalt.err (!%p3826_p5)
}
 0x376   :  { %s3855_s6 = smov 2  }
 0x377   :  { %2926 = dma.vmem_to_hbm [thread:$0]  %s2921_s25, 32, %s4014_s7, [#allocation4], %s3849_s12, %s3849_s12, %s3855_s6  }
 0x378   :  { %3842 = dma.done.wait [#allocation4], 128  }
 0x379   :  { %3843 = vsyncadd [#allocation4], 4294967168 }
 0x37a   :  { %2930 = vsyncpa [#allocation3], 1 }
 0x37b   :  { %2931 = vsyncpa [#allocation6], 1 }
 0x37c   :  { %2932 = vsyncpa [#allocation4], 1 }

</bundles_post_ra>
